<compile_context>
chip_gen: v7x
topology: tpu7x:2x2x1
jax: 0.10.0
libtpu: 0.0.40
codegen_flags: <defaults>
</compile_context>

<pallas_src>
import jax
import jax.numpy as jnp
from jax.experimental import pallas as pl
from jax.experimental.pallas import tpu as pltpu


def _se_conv1x1_kernel(g_ref, w_ref, x_ref, o_ref):
    # g_ref: (1, Cin)     raw gate logits; sigmoid applied here (EUP)
    # w_ref: (Cout, Cin)  1x1 conv weight, native OIHW view
    # x_ref: (Cin, HW)    native NCHW view of the activation (N == 1)
    # o_ref: (Cout, HW)   reshapes directly to NCHW in the wrapper
    gate = jax.nn.sigmoid(g_ref[...])                 # (1, Cin), EUP
    w_scaled = w_ref[...] * gate                      # fold gate into the small weight tile (VPU)
    o_ref[...] = jnp.dot(
        w_scaled, x_ref[...],
        preferred_element_type=jnp.float32,           # MXU matmul == 1x1 conv
    ).astype(o_ref.dtype)


def se_gate_conv1x1(x_nchw, gate_nc11, weight_oihw):
    """x_nchw: [N, Cin, H, W], gate_nc11: [N, Cin, 1, 1], weight_oihw: [Cout, Cin, 1, 1]."""
    N, Cin, H, W = x_nchw.shape
    Cout = weight_oihw.shape[0]
    assert N == 1, "module semantics: broadcast gate over a single batch element"
    HW = H * W

    # Free views (no data movement): N == 1 so NCHW is (Cin, HW)-contiguous and
    # the 1x1 OIHW weight is (Cout, Cin)-contiguous.
    x2d = x_nchw.reshape(Cin, HW)
    g2d = gate_nc11.reshape(1, Cin)
    w2d = weight_oihw.reshape(Cout, Cin)

    itemsize = jnp.dtype(x_nchw.dtype).itemsize
    cost = pl.CostEstimate(
        flops=2 * HW * Cin * Cout,
        transcendentals=Cin,
        bytes_accessed=(Cin * HW + Cout * Cin + Cin + Cout * HW) * itemsize,
    )

    out2d = pl.pallas_call(
        _se_conv1x1_kernel,
        out_shape=jax.ShapeDtypeStruct((Cout, HW), x_nchw.dtype),
        grid=(1,),  # everything fits comfortably in VMEM (< 2 MiB total)
        in_specs=[
            pl.BlockSpec((1, Cin), lambda i: (0, 0)),      # full-array blocks:
            pl.BlockSpec((Cout, Cin), lambda i: (0, 0)),   # (8,128) rule satisfied by
            pl.BlockSpec((Cin, HW), lambda i: (0, 0)),     # block == full array dims
        ],
        out_specs=pl.BlockSpec((Cout, HW), lambda i: (0, 0)),
        compiler_params=pltpu.CompilerParams(
            dimension_semantics=("arbitrary",),
        ),
        cost_estimate=cost,
    )(g2d, w2d, x2d)

    # (Cout, HW) -> (N, Cout, H, W): pure reshape, no transpose.
    return out2d.reshape(N, Cout, H, W)


if __name__ == "__main__":
    # Shapes implied by the module: Cin=1056, Cout=176, spatial 14x14, batch 1.
    N, Cin, H, W, Cout = 1, 1056, 14, 14, 176

    key = jax.random.PRNGKey(0)
    kx, kg, kw = jax.random.split(key, 3)
    x214 = jax.random.normal(kx, (N, Cin, H, W), dtype=jnp.float32)
    x218 = jax.random.normal(kg, (N, Cin, 1, 1), dtype=jnp.float32)
    # Deterministic conv weight init (kaiming-ish scale), no bias per the module.
    conv_w = jax.random.normal(kw, (Cout, Cin, 1, 1), dtype=jnp.float32) * (1.0 / jnp.sqrt(Cin))

    out = se_gate_conv1x1(x214, x218, conv_w)
    out = jax.block_until_ready(out)

    # Pure-JAX reference for sanity.
    gated = x214 * jax.nn.sigmoid(x218)
    ref = jnp.einsum("nchw,oc->nohw", gated, conv_w.reshape(Cout, Cin))
    assert out.shape == (N, Cout, H, W), out.shape
    assert jnp.allclose(out, ref, atol=2e-4, rtol=2e-4), float(jnp.max(jnp.abs(out - ref)))

    print("KERNEL_OK")
</pallas_src>

<mosaic_0001>
module attributes {stable_mosaic.version = 11 : i64} {
  func.func @_se_conv1x1_kernel(%arg0: i32, %arg1: memref<1x1056xf32, #tpu.memory_space<vmem>>, %arg2: memref<176x1056xf32, #tpu.memory_space<vmem>>, %arg3: memref<1056x196xf32, #tpu.memory_space<vmem>>, %arg4: memref<176x196xf32, #tpu.memory_space<vmem>>) attributes {dimension_semantics = [#tpu.dimension_semantics<arbitrary>], iteration_bounds = array<i64: 1>, scalar_prefetch = 0 : i64, scratch_operands = 0 : i64, tpu.core_type = #tpu.core_type<tc>, window_params = [{pipeline_mode = #tpu.pipeline_mode<synchronous>, transform_indices = @transform_0, window_bounds = array<i64: 1, 1056>}, {pipeline_mode = #tpu.pipeline_mode<synchronous>, transform_indices = @transform_1, window_bounds = array<i64: 176, 1056>}, {pipeline_mode = #tpu.pipeline_mode<synchronous>, transform_indices = @transform_2, window_bounds = array<i64: 1056, 196>}, {pipeline_mode = #tpu.pipeline_mode<synchronous>, transform_indices = @transform_3, window_bounds = array<i64: 176, 196>}]} {
    %c0 = arith.constant 0 : index
    %c0_0 = arith.constant 0 : index
    %0 = vector.load %arg1[%c0, %c0_0] : memref<1x1056xf32, #tpu.memory_space<vmem>>, vector<1x1056xf32>
    %1 = arith.negf %0 : vector<1x1056xf32>
    %2 = math.exp %1 : vector<1x1056xf32>
    %cst = arith.constant 1.000000e+00 : f32
    %3 = vector.broadcast %cst : f32 to vector<1x1056xf32>
    %4 = arith.addf %3, %2 : vector<1x1056xf32>
    %5 = arith.divf %3, %4 : vector<1x1056xf32>
    %c0_1 = arith.constant 0 : index
    %c0_2 = arith.constant 0 : index
    %6 = vector.load %arg2[%c0_1, %c0_2] : memref<176x1056xf32, #tpu.memory_space<vmem>>, vector<176x1056xf32>
    %7 = vector.broadcast %5 : vector<1x1056xf32> to vector<176x1056xf32>
    %8 = arith.mulf %6, %7 : vector<176x1056xf32>
    %c0_3 = arith.constant 0 : index
    %c0_4 = arith.constant 0 : index
    %9 = vector.load %arg3[%c0_3, %c0_4] : memref<1056x196xf32, #tpu.memory_space<vmem>>, vector<1056x196xf32>
    %cst_5 = arith.constant dense<0.000000e+00> : vector<176x196xf32>
    %10 = tpu.matmul %8, %9, %cst_5 {dimension_numbers = #tpu.dot_dimension_numbers<[1], [0], [0], [1], [0, 0, 1, 1], [], []>} : vector<176x1056xf32>, vector<1056x196xf32>, vector<176x196xf32> -> vector<176x196xf32>
    %c0_6 = arith.constant 0 : index
    %c0_7 = arith.constant 0 : index
    %11 = vector.load %arg4[%c0_6, %c0_7] : memref<176x196xf32, #tpu.memory_space<vmem>>, vector<176x196xf32>
    tpu.vector_store %arg4[%c0_6, %c0_7], %10 {strides = array<i32>} : memref<176x196xf32, #tpu.memory_space<vmem>>, vector<176x196xf32>,
    return
  }
  func.func @transform_0(%arg0: i32) -> (i32, i32) {
    %c0_i32 = arith.constant 0 : i32
    %c0_i32_0 = arith.constant 0 : i32
    %c0_i32_1 = arith.constant 0 : i32
    return %c0_i32, %c0_i32_0 : i32, i32
  }
  func.func @transform_1(%arg0: i32) -> (i32, i32) {
    %c0_i32 = arith.constant 0 : i32
    %c0_i32_0 = arith.constant 0 : i32
    %c0_i32_1 = arith.constant 0 : i32
    return %c0_i32, %c0_i32_0 : i32, i32
  }
  func.func @transform_2(%arg0: i32) -> (i32, i32) {
    %c0_i32 = arith.constant 0 : i32
    %c0_i32_0 = arith.constant 0 : i32
    %c0_i32_1 = arith.constant 0 : i32
    return %c0_i32, %c0_i32_0 : i32, i32
  }
  func.func @transform_3(%arg0: i32) -> (i32, i32) {
    %c0_i32 = arith.constant 0 : i32
    %c0_i32_0 = arith.constant 0 : i32
    %c0_i32_1 = arith.constant 0 : i32
    return %c0_i32, %c0_i32_0 : i32, i32
  }
}

</mosaic_0001>

<bundles_post_ra>
// kernel: tpu_custom_call.1
= control target key start
LH: loop header
LB: loop body
LE: loop exit
PB: predicated region body
PF: predicated region fallthrough
CT: control target
= control target key end

     0   :  { %s4399_s0 = inlined_call_operand.vmem [shape: f32[1,1056], index: 0, kind: input, shape index: {}]   ;;  %s4400_s1 = inlined_call_operand.vmem [shape: f32[176,1056], index: 1, kind: input, shape index: {}]   ;;  %s4401_s2 = inlined_call_operand.vmem [shape: f32[1056,196], index: 2, kind: input, shape index: {}]   ;;  %s4402_s3 = inlined_call_operand.hbm [shape: f32[176,196], index: 3, kind: output, shape index: {}]  }
   0x1   :  { %v473_v0 = vld [vmem:[%s4401_s2 + $0x8] sm:$0xff]  ;;  %v475_v1 = vld [vmem:[%s4401_s2 + $0x18] sm:$0xff]  ;;  %v472_v5 = vld [vmem:[%s4401_s2] sm:$0xff] }
   0x2   :  { %v601_v2 = vld [vmem:[%s4401_s2 + $0x408] sm:$0xff]  ;;  %v1873_v3 = vpack.c.bf16 %v475_v1, %v473_v0  ;;  %v603_v4 = vld [vmem:[%s4401_s2 + $0x418] sm:$0xff]  ;;  %v474_v6 = vld [vmem:[%s4401_s2 + $0x10] sm:$0xff] }
   0x3   :  { %v2001_v7 = vpack.c.bf16 %v603_v4, %v601_v2  ;;  %v1875_v8 = vpack.c.bf16 %v474_v6, %v472_v5  ;;  %v600_v9 = vld [vmem:[%s4401_s2 + $0x400] sm:$0xff]  ;;  %v602_v10 = vld [vmem:[%s4401_s2 + $0x410] sm:$0xff]  ;;  %v477_v11 = vld [vmem:[%s4401_s2 + $0x28] sm:$0xff] }
   0x4   :  { %1874 = vmatprep.subr.bf16.mxu1 %v1873_v3  ;;  %v2003_v12 = vpack.c.bf16 %v602_v10, %v600_v9  ;;  %v479_v13 = vld [vmem:[%s4401_s2 + $0x38] sm:$0xff]  ;;  %v605_v14 = vld [vmem:[%s4401_s2 + $0x428] sm:$0xff]  ;;  %v476_v18 = vld [vmem:[%s4401_s2 + $0x20] sm:$0xff] }
   0x5   :  { %v607_v15 = vld [vmem:[%s4401_s2 + $0x438] sm:$0xff]  ;;  %2002 = vmatprep.subr.bf16.mxu0 %v2001_v7  ;;  %1876 = vmatpush1.bf16.msra.mxu1 %v1875_v8  ;;  %v1877_v16 = vpack.c.bf16 %v479_v13, %v477_v11  ;;  %v478_v19 = vld [vmem:[%s4401_s2 + $0x30] sm:$0xff]  ;;  %v604_v20 = vld [vmem:[%s4401_s2 + $0x420] sm:$0xff] }
   0x6   :  { %v2005_v17 = vpack.c.bf16 %v607_v15, %v605_v14  ;;  %2004 = vmatpush1.bf16.msra.mxu0 %v2003_v12  ;;  %v1879_v21 = vpack.c.bf16 %v478_v19, %v476_v18  ;;  %v606_v22 = vld [vmem:[%s4401_s2 + $0x430] sm:$0xff]  ;;  %v481_v23 = vld [vmem:[%s4401_s2 + $0x48] sm:$0xff]  ;;  %v483_v24 = vld [vmem:[%s4401_s2 + $0x58] sm:$0xff] }
   0x7   :  { %1878 = vmatprep.subr.bf16.mxu1 %v1877_v16  ;;  %v2007_v25 = vpack.c.bf16 %v606_v22, %v604_v20  ;;  %v1881_v26 = vpack.c.bf16 %v483_v24, %v481_v23  ;;  %v609_v27 = vld [vmem:[%s4401_s2 + $0x448] sm:$0xff]  ;;  %v611_v28 = vld [vmem:[%s4401_s2 + $0x458] sm:$0xff]  ;;  %v480_v29 = vld [vmem:[%s4401_s2 + $0x40] sm:$0xff] }
   0x8   :  { %2006 = vmatprep.subr.bf16.mxu0 %v2005_v17  ;;  %v2009_v30 = vpack.c.bf16 %v611_v28, %v609_v27  ;;  %v482_v31 = vld [vmem:[%s4401_s2 + $0x50] sm:$0xff]  ;;  %v608_v32 = vld [vmem:[%s4401_s2 + $0x440] sm:$0xff]  ;;  %v485_v35 = vld [vmem:[%s4401_s2 + $0x68] sm:$0xff] }
   0x9   :  { %v610_v33 = vld [vmem:[%s4401_s2 + $0x450] sm:$0xff]  ;;  %1880 = vmatpush1.bf16.msra.mxu1 %v1879_v21  ;;  %v1883_v34 = vpack.c.bf16 %v482_v31, %v480_v29  ;;  %v487_v36 = vld [vmem:[%s4401_s2 + $0x78] sm:$0xff]  ;;  %v613_v37 = vld [vmem:[%s4401_s2 + $0x468] sm:$0xff] }
   0xa   :  { %2008 = vmatpush1.bf16.msra.mxu0 %v2007_v25  ;;  %1882 = vmatprep.subr.bf16.mxu1 %v1881_v26  ;;  %v2011_v38 = vpack.c.bf16 %v610_v33, %v608_v32  ;;  %v1885_v39 = vpack.c.bf16 %v487_v36, %v485_v35  ;;  %v615_v40 = vld [vmem:[%s4401_s2 + $0x478] sm:$0xff]  ;;  %v484_v41 = vld [vmem:[%s4401_s2 + $0x60] sm:$0xff]  ;;  %v486_v42 = vld [vmem:[%s4401_s2 + $0x70] sm:$0xff] }
   0xb   :  { %2010 = vmatprep.subr.bf16.mxu0 %v2009_v30  ;;  %v2013_v43 = vpack.c.bf16 %v615_v40, %v613_v37  ;;  %v612_v44 = vld [vmem:[%s4401_s2 + $0x460] sm:$0xff]  ;;  %v614_v45 = vld [vmem:[%s4401_s2 + $0x470] sm:$0xff]  ;;  %v489_v46 = vld [vmem:[%s4401_s2 + $0x88] sm:$0xff]  ;;  %v1887_v50 = vpack.c.bf16 %v486_v42, %v484_v41 }
   0xc   :  { %v491_v47 = vld [vmem:[%s4401_s2 + $0x98] sm:$0xff]  ;;  %v617_v48 = vld [vmem:[%s4401_s2 + $0x488] sm:$0xff]  ;;  %v2015_v51 = vpack.c.bf16 %v614_v45, %v612_v44  ;;  %v488_v53 = vld [vmem:[%s4401_s2 + $0x80] sm:$0xff] }
   0xd   :  { %v619_v49 = vld [vmem:[%s4401_s2 + $0x498] sm:$0xff]  ;;  %1884 = vmatpush1.bf16.msra.mxu1 %v1883_v34  ;;  %v1889_v52 = vpack.c.bf16 %v491_v47, %v489_v46  ;;  %v490_v54 = vld [vmem:[%s4401_s2 + $0x90] sm:$0xff]  ;;  %v616_v55 = vld [vmem:[%s4401_s2 + $0x480] sm:$0xff] }
   0xe   :  { %2012 = vmatpush1.bf16.msra.mxu0 %v2011_v38  ;;  %1886 = vmatprep.subr.bf16.mxu1 %v1885_v39  ;;  %v2017_v56 = vpack.c.bf16 %v619_v49, %v617_v48  ;;  %v618_v57 = vld [vmem:[%s4401_s2 + $0x490] sm:$0xff]  ;;  %v493_v58 = vld [vmem:[%s4401_s2 + $0xa8] sm:$0xff]  ;;  %v495_v59 = vld [vmem:[%s4401_s2 + $0xb8] sm:$0xff]  ;;  %v1891_v62 = vpack.c.bf16 %v490_v54, %v488_v53 }
   0xf   :  { %2014 = vmatprep.subr.bf16.mxu0 %v2013_v43  ;;  %v621_v60 = vld [vmem:[%s4401_s2 + $0x4a8] sm:$0xff]  ;;  %v623_v61 = vld [vmem:[%s4401_s2 + $0x4b8] sm:$0xff]  ;;  %v2019_v63 = vpack.c.bf16 %v618_v57, %v616_v55  ;;  %v1893_v0 = vpack.c.bf16 %v495_v59, %v493_v58  ;;  %v492_v1 = vld [vmem:[%s4401_s2 + $0xa0] sm:$0xff] }
  0x10   :  { %v494_v2 = vld [vmem:[%s4401_s2 + $0xb0] sm:$0xff]  ;;  %v620_v3 = vld [vmem:[%s4401_s2 + $0x4a0] sm:$0xff]  ;;  %v2021_v4 = vpack.c.bf16 %v623_v61, %v621_v60  ;;  %v497_v6 = vld [vmem:[%s4401_s2 + $0xc8] sm:$0xff] }
  0x11   :  { %1888 = vmatpush1.bf16.msra.mxu1 %v1887_v50  ;;  %v622_v5 = vld [vmem:[%s4401_s2 + $0x4b0] sm:$0xff]  ;;  %v499_v7 = vld [vmem:[%s4401_s2 + $0xd8] sm:$0xff]  ;;  %v625_v8 = vld [vmem:[%s4401_s2 + $0x4c8] sm:$0xff]  ;;  %v1895_v10 = vpack.c.bf16 %v494_v2, %v492_v1 }
  0x12   :  { %2016 = vmatpush1.bf16.msra.mxu0 %v2015_v51  ;;  %1890 = vmatprep.subr.bf16.mxu1 %v1889_v52  ;;  %v627_v9 = vld [vmem:[%s4401_s2 + $0x4d8] sm:$0xff]  ;;  %v2023_v11 = vpack.c.bf16 %v622_v5, %v620_v3  ;;  %v1897_v12 = vpack.c.bf16 %v499_v7, %v497_v6  ;;  %v496_v13 = vld [vmem:[%s4401_s2 + $0xc0] sm:$0xff]  ;;  %v498_v14 = vld [vmem:[%s4401_s2 + $0xd0] sm:$0xff] }
  0x13   :  { %2018 = vmatprep.subr.bf16.mxu0 %v2017_v56  ;;  %v624_v15 = vld [vmem:[%s4401_s2 + $0x4c0] sm:$0xff]  ;;  %v2025_v16 = vpack.c.bf16 %v627_v9, %v625_v8  ;;  %v626_v17 = vld [vmem:[%s4401_s2 + $0x4d0] sm:$0xff]  ;;  %v501_v18 = vld [vmem:[%s4401_s2 + $0xe8] sm:$0xff]  ;;  %v1899_v22 = vpack.c.bf16 %v498_v14, %v496_v13 }
  0x14   :  { %v503_v19 = vld [vmem:[%s4401_s2 + $0xf8] sm:$0xff]  ;;  %v629_v20 = vld [vmem:[%s4401_s2 + $0x4e8] sm:$0xff]  ;;  %v2027_v23 = vpack.c.bf16 %v626_v17, %v624_v15  ;;  %v500_v25 = vld [vmem:[%s4401_s2 + $0xe0] sm:$0xff] }
  0x15   :  { %1892 = vmatpush1.bf16.msra.mxu1 %v1891_v62  ;;  %v631_v21 = vld [vmem:[%s4401_s2 + $0x4f8] sm:$0xff]  ;;  %v1901_v24 = vpack.c.bf16 %v503_v19, %v501_v18  ;;  %v502_v26 = vld [vmem:[%s4401_s2 + $0xf0] sm:$0xff]  ;;  %v628_v27 = vld [vmem:[%s4401_s2 + $0x4e0] sm:$0xff] }
  0x16   :  { %2020 = vmatpush1.bf16.msra.mxu0 %v2019_v63  ;;  %1894 = vmatprep.subr.bf16.mxu1 %v1893_v0  ;;  %v2029_v28 = vpack.c.bf16 %v631_v21, %v629_v20  ;;  %v630_v29 = vld [vmem:[%s4401_s2 + $0x4f0] sm:$0xff]  ;;  %v505_v30 = vld [vmem:[%s4401_s2 + $0x108] sm:$0xff]  ;;  %v507_v31 = vld [vmem:[%s4401_s2 + $0x118] sm:$0xff]  ;;  %v1903_v34 = vpack.c.bf16 %v502_v26, %v500_v25 }
  0x17   :  { %2022 = vmatprep.subr.bf16.mxu0 %v2021_v4  ;;  %v633_v32 = vld [vmem:[%s4401_s2 + $0x508] sm:$0xff]  ;;  %v635_v33 = vld [vmem:[%s4401_s2 + $0x518] sm:$0xff]  ;;  %v2031_v35 = vpack.c.bf16 %v630_v29, %v628_v27  ;;  %v1905_v36 = vpack.c.bf16 %v507_v31, %v505_v30  ;;  %v504_v37 = vld [vmem:[%s4401_s2 + $0x100] sm:$0xff] }
  0x18   :  { %v506_v38 = vld [vmem:[%s4401_s2 + $0x110] sm:$0xff]  ;;  %v632_v39 = vld [vmem:[%s4401_s2 + $0x500] sm:$0xff]  ;;  %v2033_v40 = vpack.c.bf16 %v635_v33, %v633_v32  ;;  %v509_v42 = vld [vmem:[%s4401_s2 + $0x128] sm:$0xff] }
  0x19   :  { %1896 = vmatpush1.bf16.msra.mxu1 %v1895_v10  ;;  %v634_v41 = vld [vmem:[%s4401_s2 + $0x510] sm:$0xff]  ;;  %v511_v43 = vld [vmem:[%s4401_s2 + $0x138] sm:$0xff]  ;;  %v637_v44 = vld [vmem:[%s4401_s2 + $0x528] sm:$0xff]  ;;  %v1907_v46 = vpack.c.bf16 %v506_v38, %v504_v37 }
  0x1a   :  { %2024 = vmatpush1.bf16.msra.mxu0 %v2023_v11  ;;  %1898 = vmatprep.subr.bf16.mxu1 %v1897_v12  ;;  %v639_v45 = vld [vmem:[%s4401_s2 + $0x538] sm:$0xff]  ;;  %v2035_v47 = vpack.c.bf16 %v634_v41, %v632_v39  ;;  %v1909_v48 = vpack.c.bf16 %v511_v43, %v509_v42  ;;  %v508_v49 = vld [vmem:[%s4401_s2 + $0x120] sm:$0xff]  ;;  %v510_v50 = vld [vmem:[%s4401_s2 + $0x130] sm:$0xff] }
  0x1b   :  { %2026 = vmatprep.subr.bf16.mxu0 %v2025_v16  ;;  %v636_v51 = vld [vmem:[%s4401_s2 + $0x520] sm:$0xff]  ;;  %v2037_v52 = vpack.c.bf16 %v639_v45, %v637_v44  ;;  %v638_v53 = vld [vmem:[%s4401_s2 + $0x530] sm:$0xff]  ;;  %v513_v54 = vld [vmem:[%s4401_s2 + $0x148] sm:$0xff]  ;;  %v1911_v58 = vpack.c.bf16 %v510_v50, %v508_v49 }
  0x1c   :  { %v515_v55 = vld [vmem:[%s4401_s2 + $0x158] sm:$0xff]  ;;  %v641_v56 = vld [vmem:[%s4401_s2 + $0x548] sm:$0xff]  ;;  %v2039_v59 = vpack.c.bf16 %v638_v53, %v636_v51  ;;  %v512_v61 = vld [vmem:[%s4401_s2 + $0x140] sm:$0xff] }
  0x1d   :  { %1900 = vmatpush1.bf16.msra.mxu1 %v1899_v22  ;;  %v643_v57 = vld [vmem:[%s4401_s2 + $0x558] sm:$0xff]  ;;  %v1913_v60 = vpack.c.bf16 %v515_v55, %v513_v54  ;;  %v514_v62 = vld [vmem:[%s4401_s2 + $0x150] sm:$0xff]  ;;  %v640_v63 = vld [vmem:[%s4401_s2 + $0x540] sm:$0xff] }
  0x1e   :  { %2028 = vmatpush1.bf16.msra.mxu0 %v2027_v23  ;;  %1902 = vmatprep.subr.bf16.mxu1 %v1901_v24  ;;  %v2041_v0 = vpack.c.bf16 %v643_v57, %v641_v56  ;;  %v642_v1 = vld [vmem:[%s4401_s2 + $0x550] sm:$0xff]  ;;  %v517_v2 = vld [vmem:[%s4401_s2 + $0x168] sm:$0xff]  ;;  %v519_v3 = vld [vmem:[%s4401_s2 + $0x178] sm:$0xff]  ;;  %v1915_v6 = vpack.c.bf16 %v514_v62, %v512_v61 }
  0x1f   :  { %2030 = vmatprep.subr.bf16.mxu0 %v2029_v28  ;;  %v645_v4 = vld [vmem:[%s4401_s2 + $0x568] sm:$0xff]  ;;  %v647_v5 = vld [vmem:[%s4401_s2 + $0x578] sm:$0xff]  ;;  %v516_v7 = vld [vmem:[%s4401_s2 + $0x160] sm:$0xff]  ;;  %v2043_v8 = vpack.c.bf16 %v642_v1, %v640_v63  ;;  %v1917_v9 = vpack.c.bf16 %v519_v3, %v517_v2 }
  0x20   :  { %v518_v10 = vld [vmem:[%s4401_s2 + $0x170] sm:$0xff]  ;;  %v644_v11 = vld [vmem:[%s4401_s2 + $0x560] sm:$0xff]  ;;  %v2045_v13 = vpack.c.bf16 %v647_v5, %v645_v4  ;;  %v521_v14 = vld [vmem:[%s4401_s2 + $0x188] sm:$0xff] }
  0x21   :  { %1904 = vmatpush1.bf16.msra.mxu1 %v1903_v34  ;;  %v646_v12 = vld [vmem:[%s4401_s2 + $0x570] sm:$0xff]  ;;  %v523_v15 = vld [vmem:[%s4401_s2 + $0x198] sm:$0xff]  ;;  %v15_v16 = vld [vmem:[%s4399_s0] sm:$0xff]  ;;  %v1919_v20 = vpack.c.bf16 %v518_v10, %v516_v7 }
  0x22   :  { %2032 = vmatpush1.bf16.msra.mxu0 %v2031_v35  ;;  %1906 = vmatprep.subr.bf16.mxu1 %v1905_v36  ;;  %v649_v17 = vld [vmem:[%s4401_s2 + $0x588] sm:$0xff]  ;;  %v651_v18 = vld [vmem:[%s4401_s2 + $0x598] sm:$0xff]  ;;  %v1849_v19 = vmul.f32 -1.442695, %v15_v16  ;;  %v2047_v21 = vpack.c.bf16 %v646_v12, %v644_v11  ;;  %v1921_v22 = vpack.c.bf16 %v523_v15, %v521_v14  ;;  %v520_v23 = vld [vmem:[%s4401_s2 + $0x180] sm:$0xff] }
  0x23   :  { %2034 = vmatprep.subr.bf16.mxu0 %v2033_v40  ;;  %v522_v24 = vld [vmem:[%s4401_s2 + $0x190] sm:$0xff]  ;;  %v648_v25 = vld [vmem:[%s4401_s2 + $0x580] sm:$0xff]  ;;  %v2049_v26 = vpack.c.bf16 %v651_v18, %v649_v17  ;;  %v525_v28 = vld [vmem:[%s4401_s2 + $0x1a8] sm:$0xff] }
  0x24   :  { %2349 = vpow2.f32 %v1849_v19  ;;  %v650_v27 = vld [vmem:[%s4401_s2 + $0x590] sm:$0xff]  ;;  %v527_v29 = vld [vmem:[%s4401_s2 + $0x1b8] sm:$0xff]  ;;  %v653_v30 = vld [vmem:[%s4401_s2 + $0x5a8] sm:$0xff]  ;;  %v1923_v32 = vpack.c.bf16 %v522_v24, %v520_v23 }
  0x25   :  { %1908 = vmatpush1.bf16.msra.mxu1 %v1907_v46  ;;  %v655_v31 = vld [vmem:[%s4401_s2 + $0x5b8] sm:$0xff]  ;;  %v2051_v33 = vpack.c.bf16 %v650_v27, %v648_v25  ;;  %v1925_v34 = vpack.c.bf16 %v527_v29, %v525_v28  ;;  %v524_v35 = vld [vmem:[%s4401_s2 + $0x1a0] sm:$0xff]  ;;  %v526_v36 = vld [vmem:[%s4401_s2 + $0x1b0] sm:$0xff] }
  0x26   :  { %2036 = vmatpush1.bf16.msra.mxu0 %v2035_v47  ;;  %1910 = vmatprep.subr.bf16.mxu1 %v1909_v48  ;;  %v652_v37 = vld [vmem:[%s4401_s2 + $0x5a0] sm:$0xff]  ;;  %v2053_v38 = vpack.c.bf16 %v655_v31, %v653_v30  ;;  %v654_v39 = vld [vmem:[%s4401_s2 + $0x5b0] sm:$0xff]  ;;  %v529_v40 = vld [vmem:[%s4401_s2 + $0x1c8] sm:$0xff]  ;;  %v1927_v44 = vpack.c.bf16 %v526_v36, %v524_v35 }
  0x27   :  { %2038 = vmatprep.subr.bf16.mxu0 %v2037_v52  ;;  %v531_v41 = vld [vmem:[%s4401_s2 + $0x1d8] sm:$0xff]  ;;  %v657_v42 = vld [vmem:[%s4401_s2 + $0x5c8] sm:$0xff]  ;;  %v2055_v45 = vpack.c.bf16 %v654_v39, %v652_v37  ;;  %v528_v47 = vld [vmem:[%s4401_s2 + $0x1c0] sm:$0xff] }
  0x28   :  { %v659_v43 = vld [vmem:[%s4401_s2 + $0x5d8] sm:$0xff]  ;;  %v1929_v46 = vpack.c.bf16 %v531_v41, %v529_v40  ;;  %v530_v48 = vld [vmem:[%s4401_s2 + $0x1d0] sm:$0xff]  ;;  %v656_v49 = vld [vmem:[%s4401_s2 + $0x5c0] sm:$0xff] }
  0x29   :  { %1912 = vmatpush1.bf16.msra.mxu1 %v1911_v58  ;;  %v2057_v50 = vpack.c.bf16 %v659_v43, %v657_v42  ;;  %v658_v51 = vld [vmem:[%s4401_s2 + $0x5d0] sm:$0xff]  ;;  %v533_v52 = vld [vmem:[%s4401_s2 + $0x1e8] sm:$0xff]  ;;  %v535_v53 = vld [vmem:[%s4401_s2 + $0x1f8] sm:$0xff]  ;;  %v1931_v57 = vpack.c.bf16 %v530_v48, %v528_v47 }
  0x2a   :  { %2040 = vmatpush1.bf16.msra.mxu0 %v2039_v59  ;;  %1914 = vmatprep.subr.bf16.mxu1 %v1913_v60  ;;  %v661_v55 = vld [vmem:[%s4401_s2 + $0x5e8] sm:$0xff]  ;;  %v663_v56 = vld [vmem:[%s4401_s2 + $0x5f8] sm:$0xff]  ;;  %v2059_v59 = vpack.c.bf16 %v658_v51, %v656_v49  ;;  %v1933_v60 = vpack.c.bf16 %v535_v53, %v533_v52  ;;  %v532_v61 = vld [vmem:[%s4401_s2 + $0x1e0] sm:$0xff] }
  0x2b   :  { %2042 = vmatprep.subr.bf16.mxu0 %v2041_v0  ;;  %v534_v62 = vld [vmem:[%s4401_s2 + $0x1f0] sm:$0xff]  ;;  %v660_v63 = vld [vmem:[%s4401_s2 + $0x5e0] sm:$0xff]  ;;  %v229_v0 = vlaneseq  ;;  %v2061_v1 = vpack.c.bf16 %v663_v56, %v661_v55  ;;  %v537_v3 = vld [vmem:[%s4401_s2 + $0x208] sm:$0xff] }
  0x2c   :  { %v662_v2 = vld [vmem:[%s4401_s2 + $0x5f0] sm:$0xff]  ;;  %v539_v4 = vld [vmem:[%s4401_s2 + $0x218] sm:$0xff]  ;;  %v665_v5 = vld [vmem:[%s4401_s2 + $0x608] sm:$0xff]  ;;  %v1935_v7 = vpack.c.bf16 %v534_v62, %v532_v61 }
  0x2d   :  { %1916 = vmatpush1.bf16.msra.mxu1 %v1915_v6  ;;  %v667_v6 = vld [vmem:[%s4401_s2 + $0x618] sm:$0xff]  ;;  %v1937_v10 = vpack.c.bf16 %v539_v4, %v537_v3  ;;  %v30_v16 = vld [vmem:[%s4400_s1 + $0x8] sm:$0xff]  ;;  %v29_v19 = vld [vmem:[%s4400_s1] sm:$0xff] }
  0x2e   :  { %2044 = vmatpush1.bf16.msra.mxu0 %v2043_v8  ;;  %1918 = vmatprep.subr.bf16.mxu1 %v1917_v9  ;;  %v2350_v54 = vpop.eup %2349  ;;  %v2063_v8 = vpack.c.bf16 %v662_v2, %v660_v63  ;;  %v2804_v9 = vshrl.u32 %v229_v0, 7  ;;  %v2806_v11 = vpack.c.bf16 %v667_v6, %v665_v5  ;;  %v34_v17 = vld [vmem:[%s4400_s1 + $0x28] sm:$0xff]  ;;  %v33_v23 = vld [vmem:[%s4400_s1 + $0x20] sm:$0xff]  ;;  %v39_v24 = vld [vmem:[%s4400_s1 + $0x50] sm:$0xff] }
  0x2f   :  { %2046 = vmatprep.subr.bf16.mxu0 %v2045_v13  ;;  %v23_v58 = vadd.f32 1.0, %v2350_v54  ;;  %v43_v25 = vld [vmem:[%s4400_s1 + $0x70] sm:$0xff]  ;;  %v664_v30 = vld [vmem:[%s4401_s2 + $0x600] sm:$0xff]  ;;  %v669_v35 = vld [vmem:[%s4401_s2 + $0x628] sm:$0xff] }
  0x30   :  { %v235_v12 = vsub.s32 1, %v2804_v9  ;;  %v251_v13 = vsub.s32 5, %v2804_v9  ;;  %v231_v14 = vsub.s32 0, %v2804_v9  ;;  %v247_v15 = vsub.s32 4, %v2804_v9  ;;  %v666_v31 = vld [vmem:[%s4401_s2 + $0x610] sm:$0xff]  ;;  %v671_v36 = vld [vmem:[%s4401_s2 + $0x638] sm:$0xff] }
  0x31   :  { %1920 = vmatpush1.bf16.msra.mxu1 %v1919_v20  ;;  %2351 = vrcp.f32 %v23_v58  ;;  %v243_v18 = vsub.s32 3, %v2804_v9  ;;  %v536_v20 = vld [vmem:[%s4401_s2 + $0x200] sm:$0xff]  ;;  %v38_v42 = vld [vmem:[%s4400_s1 + $0x48] sm:$0xff]  ;;  %v2890_v47 = vpack.c.bf16 %v666_v31, %v664_v30  ;;  %v542_v49 = vld [vmem:[%s4401_s2 + $0x230] sm:$0xff]  ;;  %v2901_v52 = vpack.c.bf16 %v671_v36, %v669_v35 }
  0x32   :  { %2048 = vmatpush1.bf16.msra.mxu0 %v2047_v21  ;;  %1922 = vmatprep.subr.bf16.mxu1 %v1921_v22  ;;  %v538_v21 = vld [vmem:[%s4401_s2 + $0x210] sm:$0xff]  ;;  %v42_v43 = vld [vmem:[%s4400_s1 + $0x68] sm:$0xff]  ;;  %v540_v48 = vld [vmem:[%s4401_s2 + $0x220] sm:$0xff] }
  0x33   :  { %2050 = vmatprep.subr.bf16.mxu0 %v2049_v26  ;;  %v668_v53 = vld [vmem:[%s4401_s2 + $0x620] sm:$0xff]  ;;  %v670_v54 = vld [vmem:[%s4401_s2 + $0x630] sm:$0xff]  ;;  %v545_v55 = vld [vmem:[%s4401_s2 + $0x248] sm:$0xff]  ;;  %v1943_v62 = vpack.c.bf16 %v542_v49, %v540_v48 }
  0x34   :  { %v547_v58 = vld [vmem:[%s4401_s2 + $0x258] sm:$0xff]  ;;  %v47_v63 = vld [vmem:[%s4400_s1 + $0x90] sm:$0xff]  ;;  %v2935_v3 = vpack.c.bf16 %v670_v54, %v668_v53  ;;  %v61_v4 = vld [vmem:[%s4400_s1 + $0x100] sm:$0xff] }
  0x35   :  { %1924 = vmatpush1.bf16.msra.mxu1 %v1923_v32  ;;  %v541_v32 = vld [vmem:[%s4401_s2 + $0x228] sm:$0xff]  ;;  %v51_v0 = vld [vmem:[%s4400_s1 + $0xb0] sm:$0xff]  ;;  %v544_v5 = vld [vmem:[%s4401_s2 + $0x240] sm:$0xff] }
  0x36   :  { %2052 = vmatpush1.bf16.msra.mxu0 %v2051_v33  ;;  %1926 = vmatprep.subr.bf16.mxu1 %v1925_v34  ;;  %v1939_v33 = vpack.c.bf16 %v538_v21, %v536_v20  ;;  %v543_v34 = vld [vmem:[%s4401_s2 + $0x238] sm:$0xff]  ;;  %v546_v6 = vld [vmem:[%s4401_s2 + $0x250] sm:$0xff]  ;;  %v65_v49 = vld [vmem:[%s4400_s1 + $0x120] sm:$0xff] }
  0x37   :  { %2054 = vmatprep.subr.bf16.mxu0 %v2053_v38  ;;  %v1941_v51 = vpack.c.bf16 %v543_v34, %v541_v32  ;;  %v1947_v30 = vpack.c.bf16 %v546_v6, %v544_v5  ;;  %v70_v32 = vld [vmem:[%s4400_s1 + $0x148] sm:$0xff]  ;;  %v550_v34 = vld [vmem:[%s4401_s2 + $0x270] sm:$0xff] }
  0x38   :  { %v79_v54 = vld [vmem:[%s4400_s1 + $0x190] sm:$0xff] }
  0x39   :  { %1928 = vmatpush1.bf16.msra.mxu1 %v1927_v44  ;;  %v48_v44 = vld [vmem:[%s4400_s1 + $0x98] sm:$0xff] }
  0x3a   :  { %2056 = vmatpush1.bf16.msra.mxu0 %v2055_v45  ;;  %1930 = vmatprep.subr.bf16.mxu1 %v1929_v46 }
  0x3b   :  { %2058 = vmatprep.subr.bf16.mxu0 %v2057_v50  ;;  %v2829_v22 = vpop.eup %2351  ;;  %v52_v50 = vld [vmem:[%s4400_s1 + $0xb8] sm:$0xff] }
  0x3c   :  { %v2841_v26 = vrot.slane %v2829_v22, %v235_v12  ;;  %v2844_v27 = vrot.slane %v2829_v22, %v251_v13  ;;  %v2849_v28 = vrot.slane %v2829_v22, %v231_v14  ;;  %v2852_v29 = vrot.slane %v2829_v22, %v247_v15  ;;  %v674_v12 = vld [vmem:[%s4401_s2 + $0x650] sm:$0xff]  ;;  %v549_v13 = vld [vmem:[%s4401_s2 + $0x268] sm:$0xff] }
  0x3d   :  { %1932 = vmatpush1.bf16.msra.mxu1 %v1931_v57  ;;  %v2873_v37 = vrot.slane %v2829_v22, %v243_v18  ;;  %v677_v18 = vld [vmem:[%s4401_s2 + $0x668] sm:$0xff] }
  0x3e   :  { %2060 = vmatpush1.bf16.msra.mxu0 %v2059_v59  ;;  %1934 = vmatprep.subr.bf16.mxu1 %v1933_v60  ;;  %v275_v38 = vmul.f32 %v2841_v26, %v30_v16  ;;  %v279_v39 = vmul.f32 %v2844_v27, %v34_v17  ;;  %v274_v40 = vmul.f32 %v2849_v28, %v29_v19  ;;  %v673_v59 = vld [vmem:[%s4401_s2 + $0x648] sm:$0xff]  ;;  %v675_v60 = vld [vmem:[%s4401_s2 + $0x658] sm:$0xff] }
  0x3f   :  { %2062 = vmatprep.subr.bf16.mxu0 %v2061_v1  ;;  %v278_v41 = vmul.f32 %v2852_v29, %v33_v23  ;;  %v284_v45 = vmul.f32 %v2841_v26, %v39_v24  ;;  %v288_v46 = vmul.f32 %v2844_v27, %v43_v25  ;;  %v283_v56 = vmul.f32 %v2849_v28, %v38_v42  ;;  %v57_v1 = vld [vmem:[%s4400_s1 + $0xe0] sm:$0xff]  ;;  %v551_v17 = vld [vmem:[%s4401_s2 + $0x278] sm:$0xff]  ;;  %v66_v25 = vld [vmem:[%s4400_s1 + $0x128] sm:$0xff] }
  0x40   :  { %867 = vmatprep.mubr.f32.mxu1 %v275_v38  ;;  %1261 = vmatprep.mubr.f32.mxu0 %v279_v39  ;;  %v287_v57 = vmul.f32 %v2852_v29, %v42_v43  ;;  %v293_v61 = vmul.f32 %v2841_v26, %v48_v44  ;;  %v297_v2 = vmul.f32 %v2844_v27, %v52_v50  ;;  %v679_v19 = vld [vmem:[%s4401_s2 + $0x678] sm:$0xff]  ;;  %v676_v38 = vld [vmem:[%s4401_s2 + $0x660] sm:$0xff]  ;;  %v678_v39 = vld [vmem:[%s4401_s2 + $0x670] sm:$0xff] }
  0x41   :  { %1936 = vmatpush1.bf16.msra.mxu1 %v1935_v7  ;;  %v1945_v7 = vpack.c.bf16 %v547_v58, %v545_v55  ;;  %v292_v15 = vmul.f32 %v2849_v28, %v47_v63  ;;  %v296_v16 = vmul.f32 %v2852_v29, %v51_v0  ;;  %v302_v20 = vmul.f32 %v2841_v26, %v57_v1  ;;  %v56_v23 = vld [vmem:[%s4400_s1 + $0xd8] sm:$0xff]  ;;  %v681_v44 = vld [vmem:[%s4401_s2 + $0x688] sm:$0xff]  ;;  %v69_v50 = vld [vmem:[%s4400_s1 + $0x140] sm:$0xff] }
  0x42   :  { %2064 = vmatpush1.bf16.msra.mxu0 %v2063_v8  ;;  %1938 = vmatprep.subr.bf16.mxu1 %v1937_v10  ;;  %v2947_v8 = vpack.c.bf16 %v675_v60, %v673_v59  ;;  %v672_v10 = vld [vmem:[%s4401_s2 + $0x640] sm:$0xff]  ;;  %v306_v21 = vmul.f32 %v2844_v27, %v61_v4  ;;  %v60_v24 = vld [vmem:[%s4400_s1 + $0xf8] sm:$0xff]  ;;  %v1949_v35 = vpack.c.bf16 %v551_v17, %v549_v13 }
  0x43   :  { %2066 = vmatprep.subr.bf16.mxu0 %v2806_v11  ;;  %v2981_v31 = vpack.c.bf16 %v674_v12, %v672_v10  ;;  %v2993_v36 = vpack.c.bf16 %v679_v19, %v677_v18  ;;  %v305_v42 = vmul.f32 %v2852_v29, %v60_v24  ;;  %v555_v43 = vld [vmem:[%s4401_s2 + $0x298] sm:$0xff]  ;;  %v315_v48 = vmul.f32 %v2844_v27, %v70_v32  ;;  %v680_v60 = vld [vmem:[%s4401_s2 + $0x680] sm:$0xff]  ;;  %v78_v10 = vld [vmem:[%s4400_s1 + $0x188] sm:$0xff] }
  0x44   :  { %868 = vmatmul.mubr.f32.vlgmr.msra.gmra.mrb[0].mxu1 %v274_v40  ;;  %v553_v40 = vld [vmem:[%s4401_s2 + $0x288] sm:$0xff]  ;;  %v3030_v55 = vpack.c.bf16 %v678_v39, %v676_v38  ;;  %v310_v63 = vmul.f32 %v2849_v28, %v65_v49  ;;  %v314_v0 = vmul.f32 %v2852_v29, %v69_v50  ;;  %v559_v1 = vld [vmem:[%s4401_s2 + $0x2b8] sm:$0xff]  ;;  %v324_v6 = vmul.f32 %v2844_v27, %v79_v54  ;;  %v556_v17 = vld [vmem:[%s4401_s2 + $0x2a0] sm:$0xff] }
  0x45   :  { %1262 = vmatmul.mubr.f32.vlgmr.msra.gmra.mrb[0].mxu0 %v278_v41  ;;  %1940 = vmatpush1.bf16.msra.mxu1 %v1939_v33  ;;  %v548_v33 = vld [vmem:[%s4401_s2 + $0x260] sm:$0xff]  ;;  %v301_v41 = vmul.f32 %v2849_v28, %v56_v23  ;;  %v1953_v58 = vpack.c.bf16 %v555_v43, %v553_v40  ;;  %v687_v4 = vld [vmem:[%s4401_s2 + $0x6b8] sm:$0xff]  ;;  %v558_v18 = vld [vmem:[%s4401_s2 + $0x2b0] sm:$0xff] }
  0x46   :  { %873 = vmatprep.mubr.f32.mxu1 %v284_v45  ;;  %1267 = vmatprep.mubr.f32.mxu0 %v288_v46  ;;  %v683_v45 = vld [vmem:[%s4401_s2 + $0x698] sm:$0xff]  ;;  %v311_v46 = vmul.f32 %v2841_v26, %v66_v25  ;;  %v1951_v53 = vpack.c.bf16 %v550_v34, %v548_v33  ;;  %v686_v23 = vld [vmem:[%s4401_s2 + $0x6b0] sm:$0xff]  ;;  %v561_v24 = vld [vmem:[%s4401_s2 + $0x2c8] sm:$0xff]  ;;  %v1959_v43 = vpack.c.bf16 %v558_v18, %v556_v17 }
  0x47   :  { %2068 = vmatpush1.bf16.msra.mxu0 %v2890_v47  ;;  %1942 = vmatprep.subr.bf16.mxu1 %v1941_v51  ;;  %v75_v51 = vld [vmem:[%s4400_s1 + $0x170] sm:$0xff]  ;;  %v3039_v59 = vpack.c.bf16 %v683_v45, %v681_v44  ;;  %v84_v12 = vld [vmem:[%s4400_s1 + $0x1b8] sm:$0xff]  ;;  %v689_v33 = vld [vmem:[%s4401_s2 + $0x6c8] sm:$0xff] }
  0x48   :  { %2070 = vmatprep.subr.bf16.mxu0 %v2901_v52  ;;  %874 = vmatmul.mubr.f32.gmra.mrb[2].mxu1 %v283_v56  ;;  %v552_v56 = vld [vmem:[%s4401_s2 + $0x280] sm:$0xff]  ;;  %v320_v5 = vmul.f32 %v2841_v26, %v75_v51  ;;  %v563_v32 = vld [vmem:[%s4401_s2 + $0x2d8] sm:$0xff]  ;;  %v83_v39 = vld [vmem:[%s4400_s1 + $0x1b0] sm:$0xff] }
  0x49   :  { %1268 = vmatmul.mubr.f32.gmra.mrb[2].mxu0 %v287_v57  ;;  %879 = vmatprep.mubr.f32.mxu1 %v293_v61  ;;  %v554_v57 = vld [vmem:[%s4401_s2 + $0x290] sm:$0xff]  ;;  %v691_v34 = vld [vmem:[%s4401_s2 + $0x6d8] sm:$0xff]  ;;  %v560_v45 = vld [vmem:[%s4401_s2 + $0x2c0] sm:$0xff]  ;;  %v328_v54 = vmul.f32 %v2849_v28, %v83_v39 }
  0x4a   :  { %1944 = vmatpush1.bf16.msra.mxu1 %v1943_v62  ;;  %1273 = vmatprep.mubr.f32.mxu0 %v297_v2  ;;  %v682_v61 = vld [vmem:[%s4401_s2 + $0x690] sm:$0xff]  ;;  %v557_v62 = vld [vmem:[%s4401_s2 + $0x2a8] sm:$0xff]  ;;  %v1955_v13 = vpack.c.bf16 %v554_v57, %v552_v56  ;;  %v3131_v49 = vpack.c.bf16 %v691_v34, %v689_v33  ;;  %v688_v50 = vld [vmem:[%s4401_s2 + $0x6c0] sm:$0xff] }
  0x4b   :  { %2072 = vmatpush1.bf16.msra.mxu0 %v2935_v3  ;;  %1946 = vmatprep.subr.bf16.mxu1 %v1945_v7  ;;  %v685_v2 = vld [vmem:[%s4401_s2 + $0x6a8] sm:$0xff]  ;;  %v1957_v19 = vpack.c.bf16 %v559_v1, %v557_v62  ;;  %v87_v40 = vld [vmem:[%s4400_s1 + $0x1d0] sm:$0xff]  ;;  %v567_v57 = vld [vmem:[%s4401_s2 + $0x2f8] sm:$0xff] }
  0x4c   :  { %2074 = vmatprep.subr.bf16.mxu0 %v2947_v8  ;;  %880 = vmatmul.mubr.f32.gmra.mrb[4].mxu1 %v292_v15  ;;  %v74_v7 = vld [vmem:[%s4400_s1 + $0x168] sm:$0xff]  ;;  %v88_v15 = vld [vmem:[%s4400_s1 + $0x1d8] sm:$0xff]  ;;  %v690_v51 = vld [vmem:[%s4401_s2 + $0x6d0] sm:$0xff]  ;;  %v332_v56 = vmul.f32 %v2852_v29, %v87_v40 }
  0x4d   :  { %1274 = vmatmul.mubr.f32.gmra.mrb[4].mxu0 %v296_v16  ;;  %885 = vmatprep.mubr.f32.mxu1 %v302_v20  ;;  %v3076_v16 = vpack.c.bf16 %v682_v61, %v680_v60  ;;  %v3085_v20 = vpack.c.bf16 %v687_v4, %v685_v2  ;;  %v319_v25 = vmul.f32 %v2849_v28, %v74_v7  ;;  %v695_v60 = vld [vmem:[%s4401_s2 + $0x6f8] sm:$0xff]  ;;  %v102_v1 = vld [vmem:[%s4400_s1 + $0x248] sm:$0xff]  ;;  %v566_v7 = vld [vmem:[%s4401_s2 + $0x2f0] sm:$0xff] }
  0x4e   :  { %1279 = vmatprep.mubr.f32.mxu0 %v306_v21  ;;  %1948 = vmatpush1.bf16.msra.mxu1 %v1947_v30  ;;  %v684_v21 = vld [vmem:[%s4401_s2 + $0x6a0] sm:$0xff]  ;;  %v323_v30 = vmul.f32 %v2852_v29, %v78_v10  ;;  %v333_v38 = vmul.f32 %v2844_v27, %v88_v15  ;;  %v106_v2 = vld [vmem:[%s4400_s1 + $0x268] sm:$0xff]  ;;  %v694_v15 = vld [vmem:[%s4401_s2 + $0x6f0] sm:$0xff] }
  0x4f   :  { %2076 = vmatpush1.bf16.msra.mxu0 %v2981_v31  ;;  %1950 = vmatprep.subr.bf16.mxu1 %v1949_v35  ;;  %v329_v35 = vmul.f32 %v2841_v26, %v84_v12  ;;  %v3122_v44 = vpack.c.bf16 %v686_v23, %v684_v21  ;;  %v569_v17 = vld [vmem:[%s4401_s2 + $0x308] sm:$0xff]  ;;  %v571_v21 = vld [vmem:[%s4401_s2 + $0x318] sm:$0xff]  ;;  %v105_v33 = vld [vmem:[%s4400_s1 + $0x260] sm:$0xff] }
  0x50   :  { %2078 = vmatprep.subr.bf16.mxu0 %v2993_v36  ;;  %886 = vmatmul.mubr.f32.gmra.mrb[6].mxu1 %v301_v41  ;;  %v93_v41 = vld [vmem:[%s4400_s1 + $0x200] sm:$0xff]  ;;  %v697_v23 = vld [vmem:[%s4401_s2 + $0x708] sm:$0xff]  ;;  %v111_v34 = vld [vmem:[%s4400_s1 + $0x290] sm:$0xff] }
  0x51   :  { %1280 = vmatmul.mubr.f32.gmra.mrb[6].mxu0 %v305_v42  ;;  %891 = vmatprep.mubr.f32.mxu1 %v311_v46  ;;  %v97_v42 = vld [vmem:[%s4400_s1 + $0x220] sm:$0xff]  ;;  %v562_v46 = vld [vmem:[%s4401_s2 + $0x2d0] sm:$0xff]  ;;  %v338_v61 = vmul.f32 %v2841_v26, %v93_v41 }
  0x52   :  { %1285 = vmatprep.mubr.f32.mxu0 %v315_v48  ;;  %1952 = vmatpush1.bf16.msra.mxu1 %v1951_v53  ;;  %v1961_v48 = vpack.c.bf16 %v563_v32, %v561_v24  ;;  %v565_v53 = vld [vmem:[%s4401_s2 + $0x2e8] sm:$0xff]  ;;  %v342_v62 = vmul.f32 %v2844_v27, %v97_v42  ;;  %v1963_v4 = vpack.c.bf16 %v562_v46, %v560_v45  ;;  %v699_v24 = vld [vmem:[%s4401_s2 + $0x718] sm:$0xff]  ;;  %v101_v32 = vld [vmem:[%s4400_s1 + $0x240] sm:$0xff] }
  0x53   :  { %2080 = vmatpush1.bf16.msra.mxu0 %v3030_v55  ;;  %1954 = vmatprep.subr.bf16.mxu1 %v1953_v58  ;;  %v693_v58 = vld [vmem:[%s4401_s2 + $0x6e8] sm:$0xff]  ;;  %v1965_v10 = vpack.c.bf16 %v567_v57, %v565_v53  ;;  %v568_v40 = vld [vmem:[%s4401_s2 + $0x300] sm:$0xff]  ;;  %v570_v41 = vld [vmem:[%s4401_s2 + $0x310] sm:$0xff]  ;;  %v1969_v42 = vpack.c.bf16 %v571_v21, %v569_v17  ;;  %v356_v57 = vmul.f32 %v2841_v26, %v111_v34 }
  0x54   :  { %2082 = vmatprep.subr.bf16.mxu0 %v3039_v59  ;;  %892 = vmatmul.mubr.f32.gmra.mrb[8].mxu1 %v310_v63  ;;  %v92_v63 = vld [vmem:[%s4400_s1 + $0x1f8] sm:$0xff]  ;;  %v3177_v12 = vpack.c.bf16 %v695_v60, %v693_v58  ;;  %v696_v45 = vld [vmem:[%s4401_s2 + $0x700] sm:$0xff]  ;;  %v698_v46 = vld [vmem:[%s4401_s2 + $0x710] sm:$0xff] }
  0x55   :  { %1286 = vmatmul.mubr.f32.gmra.mrb[8].mxu0 %v314_v0  ;;  %897 = vmatprep.mubr.f32.mxu1 %v320_v5  ;;  %v96_v0 = vld [vmem:[%s4400_s1 + $0x218] sm:$0xff]  ;;  %v3168_v5 = vpack.c.bf16 %v690_v51, %v688_v50  ;;  %v337_v18 = vmul.f32 %v2849_v28, %v92_v63  ;;  %v346_v50 = vmul.f32 %v2849_v28, %v101_v32  ;;  %v110_v60 = vld [vmem:[%s4400_s1 + $0x288] sm:$0xff]  ;;  %v259_v63 = vsub.s32 7, %v2804_v9  ;;  %v702_v17 = vld [vmem:[%s4401_s2 + $0x730] sm:$0xff] }
  0x56   :  { %1291 = vmatprep.mubr.f32.mxu0 %v324_v6  ;;  %1956 = vmatpush1.bf16.msra.mxu1 %v1955_v13  ;;  %v564_v6 = vld [vmem:[%s4401_s2 + $0x2e0] sm:$0xff]  ;;  %v350_v51 = vmul.f32 %v2852_v29, %v105_v33  ;;  %v575_v53 = vld [vmem:[%s4401_s2 + $0x338] sm:$0xff]  ;;  %v355_v21 = vmul.f32 %v2849_v28, %v110_v60  ;;  %v119_v34 = vld [vmem:[%s4400_s1 + $0x2d0] sm:$0xff] }
  0x57   :  { %2084 = vmatpush1.bf16.msra.mxu0 %v3076_v16  ;;  %1958 = vmatprep.subr.bf16.mxu1 %v1957_v19  ;;  %v692_v13 = vld [vmem:[%s4401_s2 + $0x6e0] sm:$0xff]  ;;  %v341_v19 = vmul.f32 %v2852_v29, %v96_v0  ;;  %v124_v0 = vld [vmem:[%s4400_s1 + $0x2f8] sm:$0xff]  ;;  %v364_v60 = vmul.f32 %v2849_v28, %v119_v34 }
  0x58   :  { %2086 = vmatprep.subr.bf16.mxu0 %v3085_v20  ;;  %898 = vmatmul.mubr.f32.gmra.mrb[10].mxu1 %v319_v25  ;;  %v347_v25 = vmul.f32 %v2841_v26, %v102_v1  ;;  %v3214_v39 = vpack.c.bf16 %v694_v15, %v692_v13  ;;  %v1971_v1 = vpack.c.bf16 %v570_v41, %v568_v40  ;;  %v700_v15 = vld [vmem:[%s4401_s2 + $0x720] sm:$0xff]  ;;  %v587_v34 = vld [vmem:[%s4401_s2 + $0x398] sm:$0xff] }
  0x59   :  { %1292 = vmatmul.mubr.f32.gmra.mrb[10].mxu0 %v323_v30  ;;  %903 = vmatprep.mubr.f32.mxu1 %v329_v35  ;;  %v351_v30 = vmul.f32 %v2844_v27, %v106_v2  ;;  %v115_v35 = vld [vmem:[%s4400_s1 + $0x2b0] sm:$0xff]  ;;  %v3261_v2 = vpack.c.bf16 %v698_v46, %v696_v45  ;;  %v369_v33 = vmul.f32 %v2844_v27, %v124_v0  ;;  %v133_v41 = vld [vmem:[%s4400_s1 + $0x340] sm:$0xff]  ;;  %v711_v0 = vld [vmem:[%s4401_s2 + $0x778] sm:$0xff] }
  0x5a   :  { %1297 = vmatprep.mubr.f32.mxu0 %v333_v38  ;;  %1960 = vmatpush1.bf16.msra.mxu1 %v1959_v43  ;;  %v1967_v38 = vpack.c.bf16 %v566_v7, %v564_v6  ;;  %v3223_v43 = vpack.c.bf16 %v699_v24, %v697_v23  ;;  %v360_v58 = vmul.f32 %v2844_v27, %v115_v35  ;;  %v574_v6 = vld [vmem:[%s4401_s2 + $0x330] sm:$0xff]  ;;  %v239_v7 = vsub.s32 2, %v2804_v9  ;;  %v579_v24 = vld [vmem:[%s4401_s2 + $0x358] sm:$0xff]  ;;  %v576_v46 = vld [vmem:[%s4401_s2 + $0x340] sm:$0xff] }
  0x5b   :  { %2088 = vmatpush1.bf16.msra.mxu0 %v3122_v44  ;;  %1962 = vmatprep.subr.bf16.mxu1 %v1961_v48  ;;  %v573_v48 = vld [vmem:[%s4401_s2 + $0x328] sm:$0xff]  ;;  %v123_v35 = vld [vmem:[%s4400_s1 + $0x2f0] sm:$0xff]  ;;  %v3306_v40 = vrot.slane %v2829_v22, %v259_v63  ;;  %v3312_v45 = vpack.c.bf16 %v702_v17, %v700_v15 }
  0x5c   :  { %2090 = vmatprep.subr.bf16.mxu0 %v3131_v49  ;;  %904 = vmatmul.mubr.f32.gmra.mrb[12].mxu1 %v328_v54  ;;  %v701_v54 = vld [vmem:[%s4401_s2 + $0x728] sm:$0xff] }
  0x5d   :  { %1298 = vmatmul.mubr.f32.gmra.mrb[12].mxu0 %v332_v56  ;;  %909 = vmatprep.mubr.f32.mxu1 %v338_v61  ;;  %v703_v56 = vld [vmem:[%s4401_s2 + $0x738] sm:$0xff]  ;;  %v114_v61 = vld [vmem:[%s4400_s1 + $0x2a8] sm:$0xff] }
  0x5e   :  { %1303 = vmatprep.mubr.f32.mxu0 %v342_v62  ;;  %1964 = vmatpush1.bf16.msra.mxu1 %v1963_v4  ;;  %v120_v62 = vld [vmem:[%s4400_s1 + $0x2d8] sm:$0xff]  ;;  %v572_v4 = vld [vmem:[%s4401_s2 + $0x320] sm:$0xff]  ;;  %v3271_v13 = vpack.c.bf16 %v703_v56, %v701_v54  ;;  %v359_v23 = vmul.f32 %v2852_v29, %v114_v61  ;;  %v706_v56 = vld [vmem:[%s4401_s2 + $0x750] sm:$0xff]  ;;  %v368_v61 = vmul.f32 %v2852_v29, %v123_v35 }
  0x5f   :  { %2092 = vmatpush1.bf16.msra.mxu0 %v3168_v5  ;;  %1966 = vmatprep.subr.bf16.mxu1 %v1965_v10  ;;  %v1973_v10 = vpack.c.bf16 %v575_v53, %v573_v48  ;;  %v365_v32 = vmul.f32 %v2841_v26, %v120_v62  ;;  %v578_v48 = vld [vmem:[%s4401_s2 + $0x350] sm:$0xff]  ;;  %v704_v54 = vld [vmem:[%s4401_s2 + $0x740] sm:$0xff]  ;;  %v583_v62 = vld [vmem:[%s4401_s2 + $0x378] sm:$0xff] }
  0x60   :  { %2094 = vmatprep.subr.bf16.mxu0 %v3177_v12  ;;  %910 = vmatmul.mubr.f32.gmra.mrb[14].mxu1 %v337_v18  ;;  %v577_v18 = vld [vmem:[%s4401_s2 + $0x348] sm:$0xff]  ;;  %v1979_v15 = vpack.c.bf16 %v578_v48, %v576_v46  ;;  %v3364_v17 = vpack.c.bf16 %v706_v56, %v704_v54  ;;  %v137_v46 = vld [vmem:[%s4400_s1 + $0x360] sm:$0xff]  ;;  %v151_v54 = vld [vmem:[%s4400_s1 + $0x3d0] sm:$0xff] }
  0x61   :  { %1304 = vmatmul.mubr.f32.gmra.mrb[14].mxu0 %v341_v19  ;;  %915 = vmatprep.mubr.f32.mxu1 %v347_v25  ;;  %v255_v19 = vsub.s32 6, %v2804_v9  ;;  %v705_v25 = vld [vmem:[%s4401_s2 + $0x748] sm:$0xff]  ;;  %v141_v48 = vld [vmem:[%s4400_s1 + $0x380] sm:$0xff] }
  0x62   :  { %1309 = vmatprep.mubr.f32.mxu0 %v351_v30  ;;  %1968 = vmatpush1.bf16.msra.mxu1 %v1967_v38  ;;  %v707_v30 = vld [vmem:[%s4401_s2 + $0x758] sm:$0xff]  ;;  %v129_v38 = vld [vmem:[%s4400_s1 + $0x320] sm:$0xff]  ;;  %v709_v63 = vld [vmem:[%s4401_s2 + $0x768] sm:$0xff] }
  0x63   :  { %2096 = vmatpush1.bf16.msra.mxu0 %v3214_v39  ;;  %1970 = vmatprep.subr.bf16.mxu1 %v1969_v42  ;;  %v1975_v42 = vpack.c.bf16 %v574_v6, %v572_v4  ;;  %v3324_v53 = vpack.c.bf16 %v707_v30, %v705_v25  ;;  %v128_v4 = vld [vmem:[%s4400_s1 + $0x318] sm:$0xff]  ;;  %v710_v25 = vld [vmem:[%s4401_s2 + $0x770] sm:$0xff]  ;;  %v585_v30 = vld [vmem:[%s4401_s2 + $0x388] sm:$0xff] }
  0x64   :  { %2098 = vmatprep.subr.bf16.mxu0 %v3223_v43  ;;  %916 = vmatmul.mubr.f32.gmra.mrb[16].mxu1 %v346_v50  ;;  %v3321_v50 = vrot.slane %v2829_v22, %v239_v7  ;;  %v132_v6 = vld [vmem:[%s4400_s1 + $0x338] sm:$0xff]  ;;  %v138_v7 = vld [vmem:[%s4400_s1 + $0x368] sm:$0xff] }
  0x65   :  { %1310 = vmatmul.mubr.f32.gmra.mrb[16].mxu0 %v350_v51  ;;  %921 = vmatprep.mubr.f32.mxu1 %v356_v57  ;;  %v1977_v51 = vpack.c.bf16 %v579_v24, %v577_v18  ;;  %v581_v57 = vld [vmem:[%s4401_s2 + $0x368] sm:$0xff]  ;;  %v580_v18 = vld [vmem:[%s4401_s2 + $0x360] sm:$0xff] }
  0x66   :  { %1315 = vmatprep.mubr.f32.mxu0 %v360_v58  ;;  %1972 = vmatpush1.bf16.msra.mxu1 %v1971_v1  ;;  %v3336_v58 = vrot.slane %v2829_v22, %v255_v19  ;;  %v374_v22 = vmul.f32 %v2841_v26, %v129_v38  ;;  %v378_v1 = vmul.f32 %v2844_v27, %v133_v41  ;;  %v582_v19 = vld [vmem:[%s4401_s2 + $0x370] sm:$0xff]  ;;  %v708_v24 = vld [vmem:[%s4401_s2 + $0x760] sm:$0xff]  ;;  %v713_v35 = vld [vmem:[%s4401_s2 + $0x788] sm:$0xff] }
  0x67   :  { %2100 = vmatpush1.bf16.msra.mxu0 %v3261_v2  ;;  %1974 = vmatprep.subr.bf16.mxu1 %v1973_v10  ;;  %v142_v10 = vld [vmem:[%s4400_s1 + $0x388] sm:$0xff]  ;;  %v715_v38 = vld [vmem:[%s4401_s2 + $0x798] sm:$0xff]  ;;  %v383_v41 = vmul.f32 %v2841_v26, %v138_v7  ;;  %v1983_v56 = vpack.c.bf16 %v582_v19, %v580_v18  ;;  %v396_v19 = vmul.f32 %v2844_v27, %v151_v54 }
  0x68   :  { %2102 = vmatprep.subr.bf16.mxu0 %v3271_v13  ;;  %922 = vmatmul.mubr.f32.gmra.mrb[18].mxu1 %v355_v21  ;;  %v1981_v21 = vpack.c.bf16 %v583_v62, %v581_v57  ;;  %v3410_v57 = vpack.c.bf16 %v710_v25, %v708_v24  ;;  %v1985_v62 = vpack.c.bf16 %v587_v34, %v585_v30  ;;  %v591_v7 = vld [vmem:[%s4401_s2 + $0x3b8] sm:$0xff]  ;;  %v150_v24 = vld [vmem:[%s4400_s1 + $0x3c8] sm:$0xff]  ;;  %v588_v34 = vld [vmem:[%s4401_s2 + $0x3a0] sm:$0xff] }
  0x69   :  { %1316 = vmatmul.mubr.f32.gmra.mrb[18].mxu0 %v359_v23  ;;  %927 = vmatprep.mubr.f32.mxu1 %v365_v32  ;;  %v3373_v23 = vpack.c.bf16 %v711_v0, %v709_v63  ;;  %v373_v32 = vmul.f32 %v2849_v28, %v128_v4  ;;  %v3419_v63 = vpack.c.bf16 %v715_v38, %v713_v35  ;;  %v712_v0 = vld [vmem:[%s4401_s2 + $0x780] sm:$0xff]  ;;  %v156_v25 = vld [vmem:[%s4400_s1 + $0x3f8] sm:$0xff]  ;;  %v590_v35 = vld [vmem:[%s4401_s2 + $0x3b0] sm:$0xff] }
  0x6a   :  { %1321 = vmatprep.mubr.f32.mxu0 %v369_v33  ;;  %1976 = vmatpush1.bf16.msra.mxu1 %v1975_v42  ;;  %v377_v33 = vmul.f32 %v2852_v29, %v132_v6  ;;  %v387_v42 = vmul.f32 %v2844_v27, %v142_v10  ;;  %v382_v4 = vmul.f32 %v2849_v28, %v137_v46  ;;  %v717_v10 = vld [vmem:[%s4401_s2 + $0x7a8] sm:$0xff]  ;;  %v160_v30 = vld [vmem:[%s4400_s1 + $0x418] sm:$0xff]  ;;  %v718_v46 = vld [vmem:[%s4401_s2 + $0x7b0] sm:$0xff] }
  0x6b   :  { %2104 = vmatpush1.bf16.msra.mxu0 %v3312_v45  ;;  %1978 = vmatprep.subr.bf16.mxu1 %v1977_v51  ;;  %v147_v51 = vld [vmem:[%s4400_s1 + $0x3b0] sm:$0xff]  ;;  %v386_v6 = vmul.f32 %v2852_v29, %v141_v48  ;;  %v593_v48 = vld [vmem:[%s4401_s2 + $0x3c8] sm:$0xff]  ;;  %v395_v54 = vmul.f32 %v2852_v29, %v150_v24  ;;  %v720_v24 = vld [vmem:[%s4401_s2 + $0x7c0] sm:$0xff] }
  0x6c   :  { %2106 = vmatprep.subr.bf16.mxu0 %v3324_v53  ;;  %928 = vmatmul.mubr.f32.gmra.mrb[20].mxu1 %v364_v60  ;;  %v584_v60 = vld [vmem:[%s4401_s2 + $0x380] sm:$0xff]  ;;  %v392_v18 = vmul.f32 %v2841_v26, %v147_v51 }
  0x6d   :  { %1322 = vmatmul.mubr.f32.gmra.mrb[20].mxu0 %v368_v61  ;;  %933 = vmatprep.mubr.f32.mxu1 %v374_v22  ;;  %v586_v61 = vld [vmem:[%s4401_s2 + $0x390] sm:$0xff] }
  0x6e   :  { %1327 = vmatprep.mubr.f32.mxu0 %v378_v1  ;;  %1980 = vmatpush1.bf16.msra.mxu1 %v1979_v15  ;;  %v714_v22 = vld [vmem:[%s4401_s2 + $0x790] sm:$0xff]  ;;  %v589_v1 = vld [vmem:[%s4401_s2 + $0x3a8] sm:$0xff]  ;;  %v719_v15 = vld [vmem:[%s4401_s2 + $0x7b8] sm:$0xff] }
  0x6f   :  { %2108 = vmatpush1.bf16.msra.mxu0 %v3364_v17  ;;  %1982 = vmatprep.subr.bf16.mxu1 %v1981_v21  ;;  %v146_v21 = vld [vmem:[%s4400_s1 + $0x3a8] sm:$0xff]  ;;  %v1989_v38 = vpack.c.bf16 %v591_v7, %v589_v1  ;;  %v159_v1 = vld [vmem:[%s4400_s1 + $0x410] sm:$0xff]  ;;  %v1991_v7 = vpack.c.bf16 %v590_v35, %v588_v34  ;;  %v599_v35 = vld [vmem:[%s4401_s2 + $0x3f8] sm:$0xff] }
  0x70   :  { %2110 = vmatprep.subr.bf16.mxu0 %v3373_v23  ;;  %934 = vmatmul.mubr.f32.gmra.mrb[22].mxu1 %v373_v32  ;;  %v1987_v32 = vpack.c.bf16 %v586_v61, %v584_v60  ;;  %v391_v51 = vmul.f32 %v2849_v28, %v146_v21  ;;  %v721_v60 = vld [vmem:[%s4401_s2 + $0x7c8] sm:$0xff]  ;;  %v723_v61 = vld [vmem:[%s4401_s2 + $0x7d8] sm:$0xff]  ;;  %v404_v34 = vmul.f32 %v2852_v29, %v159_v1  ;;  %v598_v1 = vld [vmem:[%s4401_s2 + $0x3f0] sm:$0xff] }
  0x71   :  { %1328 = vmatmul.mubr.f32.gmra.mrb[22].mxu0 %v377_v33  ;;  %939 = vmatprep.mubr.f32.mxu1 %v383_v41  ;;  %v3456_v33 = vpack.c.bf16 %v714_v22, %v712_v0  ;;  %v3465_v41 = vpack.c.bf16 %v719_v15, %v717_v10  ;;  %v405_v0 = vmul.f32 %v2844_v27, %v160_v30  ;;  %v155_v22 = vld [vmem:[%s4400_s1 + $0x3f0] sm:$0xff]  ;;  %v592_v15 = vld [vmem:[%s4401_s2 + $0x3c0] sm:$0xff]  ;;  %v597_v30 = vld [vmem:[%s4401_s2 + $0x3e8] sm:$0xff] }
  0x72   :  { %1333 = vmatprep.mubr.f32.mxu0 %v387_v42  ;;  %1984 = vmatpush1.bf16.msra.mxu1 %v1983_v56  ;;  %v716_v42 = vld [vmem:[%s4401_s2 + $0x7a0] sm:$0xff]  ;;  %v595_v56 = vld [vmem:[%s4401_s2 + $0x3d8] sm:$0xff]  ;;  %v3511_v21 = vpack.c.bf16 %v723_v61, %v721_v60  ;;  %v178_v60 = vld [vmem:[%s4400_s1 + $0x4a8] sm:$0xff] }
  0x73   :  { %2112 = vmatpush1.bf16.msra.mxu0 %v3410_v57  ;;  %1986 = vmatprep.subr.bf16.mxu1 %v1985_v62  ;;  %v401_v62 = vmul.f32 %v2841_v26, %v156_v25  ;;  %v3502_v10 = vpack.c.bf16 %v718_v46, %v716_v42  ;;  %v722_v25 = vld [vmem:[%s4401_s2 + $0x7d0] sm:$0xff]  ;;  %v727_v42 = vld [vmem:[%s4401_s2 + $0x7f8] sm:$0xff] }
  0x74   :  { %2114 = vmatprep.subr.bf16.mxu0 %v3419_v63  ;;  %940 = vmatmul.mubr.f32.gmra.mrb[24].mxu1 %v382_v4  ;;  %v165_v4 = vld [vmem:[%s4400_s1 + $0x440] sm:$0xff] }
  0x75   :  { %1334 = vmatmul.mubr.f32.gmra.mrb[24].mxu0 %v386_v6  ;;  %945 = vmatprep.mubr.f32.mxu1 %v392_v18  ;;  %v169_v6 = vld [vmem:[%s4400_s1 + $0x460] sm:$0xff]  ;;  %v594_v18 = vld [vmem:[%s4401_s2 + $0x3d0] sm:$0xff]  ;;  %v410_v46 = vmul.f32 %v2841_v26, %v165_v4 }
  0x76   :  { %1339 = vmatprep.mubr.f32.mxu0 %v396_v19  ;;  %1988 = vmatpush1.bf16.msra.mxu1 %v1987_v32  ;;  %v1993_v19 = vpack.c.bf16 %v595_v56, %v593_v48  ;;  %v400_v32 = vmul.f32 %v2849_v28, %v155_v22  ;;  %v414_v48 = vmul.f32 %v2844_v27, %v169_v6  ;;  %v174_v56 = vld [vmem:[%s4400_s1 + $0x488] sm:$0xff]  ;;  %v724_v6 = vld [vmem:[%s4401_s2 + $0x7e0] sm:$0xff] }
  0x77   :  { %2116 = vmatpush1.bf16.msra.mxu0 %v3456_v33  ;;  %1990 = vmatprep.subr.bf16.mxu1 %v1989_v38  ;;  %v725_v38 = vld [vmem:[%s4401_s2 + $0x7e8] sm:$0xff]  ;;  %v1995_v61 = vpack.c.bf16 %v594_v18, %v592_v15  ;;  %v1997_v22 = vpack.c.bf16 %v599_v35, %v597_v30  ;;  %v423_v30 = vmul.f32 %v2844_v27, %v178_v60  ;;  %v183_v35 = vld [vmem:[%s4400_s1 + $0x4d0] sm:$0xff] }
  0x78   :  { %2118 = vmatprep.subr.bf16.mxu0 %v3465_v41  ;;  %946 = vmatmul.mubr.f32.gmra.mrb[26].mxu1 %v391_v51  ;;  %v164_v51 = vld [vmem:[%s4400_s1 + $0x438] sm:$0xff]  ;;  %v3557_v4 = vpack.c.bf16 %v727_v42, %v725_v38  ;;  %v187_v38 = vld [vmem:[%s4400_s1 + $0x4f0] sm:$0xff] }
  0x79   :  { %1340 = vmatmul.mubr.f32.gmra.mrb[26].mxu0 %v395_v54  ;;  %951 = vmatprep.mubr.f32.mxu1 %v401_v62  ;;  %v168_v54 = vld [vmem:[%s4400_s1 + $0x458] sm:$0xff]  ;;  %v3548_v62 = vpack.c.bf16 %v722_v25, %v720_v24  ;;  %v409_v15 = vmul.f32 %v2849_v28, %v164_v51  ;;  %v419_v25 = vmul.f32 %v2841_v26, %v174_v56 }
  0x7a   :  { %1345 = vmatprep.mubr.f32.mxu0 %v405_v0  ;;  %1992 = vmatpush1.bf16.msra.mxu1 %v1991_v7  ;;  %v596_v0 = vld [vmem:[%s4401_s2 + $0x3e0] sm:$0xff]  ;;  %v726_v7 = vld [vmem:[%s4401_s2 + $0x7f0] sm:$0xff]  ;;  %v413_v18 = vmul.f32 %v2852_v29, %v168_v54  ;;  %v731_v24 = vld [vmem:[%s4401_s2 + $0x818] sm:$0xff]  ;;  %v428_v56 = vmul.f32 %v2841_v26, %v183_v35  ;;  %v432_v60 = vmul.f32 %v2844_v27, %v187_v38 }
  0x7b   :  { %2120 = vmatpush1.bf16.msra.mxu0 %v3502_v10  ;;  %1994 = vmatprep.subr.bf16.mxu1 %v1993_v19  ;;  %v729_v19 = vld [vmem:[%s4401_s2 + $0x808] sm:$0xff]  ;;  %v1999_v42 = vpack.c.bf16 %v598_v1, %v596_v0  ;;  %v196_v1 = vld [vmem:[%s4400_s1 + $0x538] sm:$0xff] }
  0x7c   :  { %2122 = vmatprep.subr.bf16.mxu0 %v3511_v21  ;;  %952 = vmatmul.mubr.f32.gmra.mrb[28].mxu1 %v400_v32  ;;  %v173_v32 = vld [vmem:[%s4400_s1 + $0x480] sm:$0xff]  ;;  %v186_v0 = vld [vmem:[%s4400_s1 + $0x4e8] sm:$0xff]  ;;  %v200_v38 = vld [vmem:[%s4400_s1 + $0x558] sm:$0xff] }
  0x7d   :  { %1346 = vmatmul.mubr.f32.gmra.mrb[28].mxu0 %v404_v34  ;;  %957 = vmatprep.mubr.f32.mxu1 %v410_v46  ;;  %v177_v34 = vld [vmem:[%s4400_s1 + $0x4a0] sm:$0xff]  ;;  %v3588_v46 = vpack.c.bf16 %v726_v7, %v724_v6  ;;  %v418_v51 = vmul.f32 %v2849_v28, %v173_v32  ;;  %v431_v7 = vmul.f32 %v2852_v29, %v186_v0 }
  0x7e   :  { %1351 = vmatprep.mubr.f32.mxu0 %v414_v48  ;;  %1996 = vmatpush1.bf16.msra.mxu1 %v1995_v61  ;;  %v2129_v48 = vpack.c.bf16 %v731_v24, %v729_v19  ;;  %v422_v54 = vmul.f32 %v2852_v29, %v177_v34  ;;  %v182_v61 = vld [vmem:[%s4400_s1 + $0x4c8] sm:$0xff]  ;;  %v191_v19 = vld [vmem:[%s4400_s1 + $0x510] sm:$0xff]  ;;  %v201_v24 = vld [vmem:[%s4400_s1 + $0x560] sm:$0xff] }
  0x7f   :  { %2124 = vmatpush1.bf16.msra.mxu0 %v3548_v62  ;;  %1998 = vmatprep.subr.bf16.mxu1 %v1997_v22  ;;  %v192_v22 = vld [vmem:[%s4400_s1 + $0x518] sm:$0xff]  ;;  %v427_v6 = vmul.f32 %v2849_v28, %v182_v61  ;;  %v446_v34 = vmul.f32 %v2841_v26, %v201_v24  ;;  %v209_v0 = vld [vmem:[%s4400_s1 + $0x5a0] sm:$0xff]  ;;  %v222_v24 = vld [vmem:[%s4400_s1 + $0x608] sm:$0xff] }
  0x80   :  { %2126 = vmatprep.subr.bf16.mxu0 %v3557_v4  ;;  %958 = vmatmul.mubr.f32.gmra.mrb[30].mxu1 %v409_v15  ;;  %v437_v15 = vmul.f32 %v2841_v26, %v192_v22  ;;  %v213_v22 = vld [vmem:[%s4400_s1 + $0x5c0] sm:$0xff] }
  0x81   :  { %1352 = vmatmul.mubr.f32.gmra.mrb[30].mxu0 %v413_v18  ;;  %963 = vmatprep.mubr.f32.mxu1 %v419_v25  ;;  %v441_v18 = vmul.f32 %v2844_v27, %v196_v1  ;;  %v205_v25 = vld [vmem:[%s4400_s1 + $0x580] sm:$0xff]  ;;  %v219_v1 = vld [vmem:[%s4400_s1 + $0x5f0] sm:$0xff] }
  0x82   :  { %1357 = vmatprep.mubr.f32.mxu0 %v423_v30  ;;  %2000 = vmatpush1.bf16.msra.mxu1 %v1999_v42  ;;  %v436_v30 = vmul.f32 %v2849_v28, %v191_v19  ;;  %v450_v35 = vmul.f32 %v2844_v27, %v205_v25  ;;  %v204_v42 = vld [vmem:[%s4400_s1 + $0x578] sm:$0xff] }
  0x83   :  { %2128 = vmatpush1.bf16.msra.mxu0 %v3588_v46  ;;  %2137 = vmatprep.subr.bf16.mxu1 %v2806_v11  ;;  %v195_v11 = vld [vmem:[%s4400_s1 + $0x530] sm:$0xff]  ;;  %v32_v25 = vld [vmem:[%s4400_s1 + $0x18] sm:$0xff] }
  0x84   :  { %2130 = vmatprep.subr.bf16.mxu0 %v2129_v48  ;;  %964 = vmatmul.mubr.f32.gmra.mrb[32].mxu1 %v418_v51  ;;  %v440_v32 = vmul.f32 %v2852_v29, %v195_v11  ;;  %v210_v48 = vld [vmem:[%s4400_s1 + $0x5a8] sm:$0xff] }
  0x85   :  { %1358 = vmatmul.mubr.f32.gmra.mrb[32].mxu0 %v422_v54  ;;  %969 = vmatprep.mubr.f32.mxu1 %v428_v56  ;;  %v214_v51 = vld [vmem:[%s4400_s1 + $0x5c8] sm:$0xff]  ;;  %v445_v54 = vmul.f32 %v2849_v28, %v200_v38  ;;  %v449_v56 = vmul.f32 %v2852_v29, %v204_v42 }
  0x86   :  { %1363 = vmatprep.mubr.f32.mxu0 %v432_v60  ;;  %v455_v60 = vmul.f32 %v2841_v26, %v210_v48  ;;  %v459_v61 = vmul.f32 %v2844_v27, %v214_v51  ;;  %v218_v11 = vld [vmem:[%s4400_s1 + $0x5e8] sm:$0xff] }
  0x88   :  { %970 = vmatmul.mubr.f32.gmra.mrb[34].mxu1 %v427_v6  ;;  %v223_v6 = vld [vmem:[%s4400_s1 + $0x610] sm:$0xff] }
  0x89   :  { %1364 = vmatmul.mubr.f32.gmra.mrb[34].mxu0 %v431_v7  ;;  %975 = vmatprep.mubr.f32.mxu1 %v437_v15  ;;  %v454_v7 = vmul.f32 %v2849_v28, %v209_v0  ;;  %v458_v15 = vmul.f32 %v2852_v29, %v213_v22  ;;  %v468_v19 = vmul.f32 %v2844_v27, %v223_v6 }
  0x8a   :  { %1369 = vmatprep.mubr.f32.mxu0 %v441_v18  ;;  %v464_v18 = vmul.f32 %v2841_v26, %v219_v1 }
  0x8c   :  { %976 = vmatmul.mubr.f32.gmra.mrb[36].mxu1 %v436_v30  ;;  %v36_v30 = vld [vmem:[%s4400_s1 + $0x38] sm:$0xff] }
  0x8d   :  { %1370 = vmatmul.mubr.f32.gmra.mrb[36].mxu0 %v440_v32  ;;  %981 = vmatprep.mubr.f32.mxu1 %v446_v34 }
  0x8e   :  { %1375 = vmatprep.mubr.f32.mxu0 %v450_v35 }
  0x90   :  { %982 = vmatmul.mubr.f32.gmra.mrb[38].mxu1 %v445_v54 }
  0x91   :  { %1376 = vmatmul.mubr.f32.gmra.mrb[38].mxu0 %v449_v56  ;;  %987 = vmatprep.mubr.f32.mxu1 %v455_v60 }
  0x92   :  { %1381 = vmatprep.mubr.f32.mxu0 %v459_v61 }
  0x93   :  { %8 = vsyncpa [#allocation3], 0  ;;  %v463_v26 = vmul.f32 %v2849_v28, %v218_v11  ;;  %v467_v27 = vmul.f32 %v2852_v29, %v222_v24  ;;  %v277_v32 = vmul.f32 %v2873_v37, %v32_v25  ;;  %v281_v34 = vmul.f32 %v3306_v40, %v36_v30  ;;  %v31_v35 = vld [vmem:[%s4400_s1 + $0x10] sm:$0xff]  ;;  %v41_v28 = vld [vmem:[%s4400_s1 + $0x60] sm:$0xff] }
  0x94   :  { %988 = vmatmul.mubr.f32.gmra.mrb[40].mxu1 %v454_v7  ;;  %v35_v38 = vld [vmem:[%s4400_s1 + $0x30] sm:$0xff]  ;;  %v45_v29 = vld [vmem:[%s4400_s1 + $0x80] sm:$0xff]  ;;  %v276_v51 = vmul.f32 %v3321_v50, %v31_v35  ;;  %v733_v56 = vld [vmem:[%s4401_s2 + $0x828] sm:$0xff]  ;;  %v286_v61 = vmul.f32 %v2873_v37, %v41_v28  ;;  %vm736_vm0 = vcmask 261120   ;;  %vm1789_vm1 = vcmask 556032  }
  0x95   :  { %1382 = vmatmul.mubr.f32.gmra.mrb[40].mxu0 %v458_v15  ;;  %993 = vmatprep.mubr.f32.mxu1 %v464_v18  ;;  %v728_v42 = vld [vmem:[%s4401_s2 + $0x800] sm:$0xff]  ;;  %v730_v48 = vld [vmem:[%s4401_s2 + $0x810] sm:$0xff]  ;;  %v280_v54 = vmul.f32 %v3336_v58, %v35_v38  ;;  %v735_v60 = vld [vmem:[%s4401_s2 + $0x838] sm:$0xff]  ;;  %v290_v1 = vmul.f32 %v3306_v40, %v45_v29 }
  0x96   :  { %1387 = vmatprep.mubr.f32.mxu0 %v468_v19  ;;  %v40_v0 = vld [vmem:[%s4400_s1 + $0x58] sm:$0xff]  ;;  %v2131_v6 = vpack.c.bf16 %v730_v48, %v728_v42  ;;  %v50_v7 = vld [vmem:[%s4400_s1 + $0xa8] sm:$0xff]  ;;  %v2133_v19 = vpack.c.bf16 %v735_v60, %v733_v56  ;;  %v732_v25 = vld [vmem:[%s4401_s2 + $0x820] sm:$0xff] }
  0x97   :  { %v44_v22 = vld [vmem:[%s4400_s1 + $0x78] sm:$0xff]  ;;  %v16_v15 = vld [vmem:[%s4399_s0 + $0x8] sm:$0x1]  ;;  %v285_v11 = vmul.f32 %v3321_v50, %v40_v0  ;;  %v734_v30 = vld [vmem:[%s4401_s2 + $0x830] sm:$0xff] }
  0x98   :  { %994 = vmatmul.mubr.f32.gmra.mrb[42].mxu1 %v463_v26  ;;  %v54_v18 = vld [vmem:[%s4400_s1 + $0xc8] sm:$0xff]  ;;  %v289_v24 = vmul.f32 %v3336_v58, %v44_v22  ;;  %v295_v26 = vmul.f32 %v2873_v37, %v50_v7  ;;  %v63_v38 = vld [vmem:[%s4400_s1 + $0x110] sm:$0xff]  ;;  %v2135_v28 = vpack.c.bf16 %v734_v30, %v732_v25  ;;  %v72_v56 = vld [vmem:[%s4400_s1 + $0x158] sm:$0xff] }
  0x99   :  { %1388 = vmatmul.mubr.f32.gmra.mrb[42].mxu0 %v467_v27  ;;  %1064 = vmatprep.mubr.f32.mxu1 %v277_v32  ;;  %v49_v27 = vld [vmem:[%s4400_s1 + $0xa0] sm:$0xff]  ;;  %v299_v35 = vmul.f32 %v3306_v40, %v54_v18  ;;  %v67_v22 = vld [vmem:[%s4400_s1 + $0x130] sm:$0xff]  ;;  %v90_v25 = vld [vmem:[%s4400_s1 + $0x1e8] sm:$0xff] }
  0x9a   :  { %1458 = vmatprep.mubr.f32.mxu0 %v281_v34  ;;  %v53_v32 = vld [vmem:[%s4400_s1 + $0xc0] sm:$0xff]  ;;  %v1850_v34 = vmul.f32 -1.442695, %v16_v15  ;;  %v294_v29 = vmul.f32 %v3321_v50, %v49_v27  ;;  %v312_v15 = vmul.f32 %v3321_v50, %v67_v22 }
  0x9b   :  { %v298_v42 = vmul.f32 %v3336_v58, %v53_v32  ;;  %v81_v7 = vld [vmem:[%s4400_s1 + $0x1a0] sm:$0xff]  ;;  %v335_v32 = vmul.f32 %v3306_v40, %v90_v25 }
  0x9c   :  { %1065 = vmatmul.mubr.f32.vlgmr.msra.gmra.mrb[0].mxu1 %v276_v51  ;;  %v308_v51 = vmul.f32 %v3306_v40, %v63_v38  ;;  %2353 = vpow2.f32 %v1850_v34  ;;  %v85_v34 = vld [vmem:[%s4400_s1 + $0x1c0] sm:$0xff] }
  0x9d   :  { %1459 = vmatmul.mubr.f32.vlgmr.msra.gmra.mrb[0].mxu0 %v280_v54  ;;  %2153 = vmatpush1.bf16.msra.mxu1 %v2890_v47  ;;  %v59_v47 = vld [vmem:[%s4400_s1 + $0xf0] sm:$0xff]  ;;  %v58_v54 = vld [vmem:[%s4400_s1 + $0xe8] sm:$0xff]  ;;  %v37_v9 = vld [vmem:[%s4400_s1 + $0x40] sm:$0xff] }
  0x9e   :  { %1070 = vmatprep.mubr.f32.mxu1 %v286_v61  ;;  %1464 = vmatprep.mubr.f32.mxu0 %v290_v1  ;;  %v304_v48 = vmul.f32 %v2873_v37, %v59_v47  ;;  %v303_v60 = vmul.f32 %v3321_v50, %v58_v54  ;;  %v71_v1 = vld [vmem:[%s4400_s1 + $0x150] sm:$0xff]  ;;  %v108_v54 = vld [vmem:[%s4400_s1 + $0x278] sm:$0xff] }
  0x9f   :  { %2132 = vmatpush1.bf16.msra.mxu0 %v2131_v6  ;;  %2138 = vmatprep.subr.bf16.mxu1 %v2901_v52  ;;  %v62_v52 = vld [vmem:[%s4400_s1 + $0x108] sm:$0xff]  ;;  %v77_v6 = vld [vmem:[%s4400_s1 + $0x180] sm:$0xff]  ;;  %v316_v18 = vmul.f32 %v3336_v58, %v71_v1  ;;  %v99_v47 = vld [vmem:[%s4400_s1 + $0x230] sm:$0xff] }
  0xa0   :  { %2134 = vmatprep.subr.bf16.mxu0 %v2133_v19  ;;  %1071 = vmatmul.mubr.f32.gmra.mrb[2].mxu1 %v285_v11  ;;  %v307_v61 = vmul.f32 %v3336_v58, %v62_v52  ;;  %v326_v19 = vmul.f32 %v3306_v40, %v81_v7  ;;  %v76_v11 = vld [vmem:[%s4400_s1 + $0x178] sm:$0xff]  ;;  %v122_v7 = vld [vmem:[%s4400_s1 + $0x2e8] sm:$0xff] }
  0xa1   :  { %1465 = vmatmul.mubr.f32.gmra.mrb[2].mxu0 %v289_v24  ;;  %1076 = vmatprep.mubr.f32.mxu1 %v295_v26  ;;  %v86_v24 = vld [vmem:[%s4400_s1 + $0x1c8] sm:$0xff]  ;;  %v321_v26 = vmul.f32 %v3321_v50, %v76_v11  ;;  %v367_v11 = vmul.f32 %v2873_v37, %v122_v7 }
  0xa2   :  { %2154 = vmatpush1.bf16.msra.mxu1 %v2935_v3  ;;  %1470 = vmatprep.mubr.f32.mxu0 %v299_v35  ;;  %v68_v3 = vld [vmem:[%s4400_s1 + $0x138] sm:$0xff]  ;;  %v95_v35 = vld [vmem:[%s4400_s1 + $0x210] sm:$0xff] }
  0xa3   :  { %2139 = vmatprep.subr.bf16.mxu1 %v2947_v8  ;;  %2136 = vmatpush1.bf16.msra.mxu0 %v2135_v28  ;;  %v313_v0 = vmul.f32 %v2873_v37, %v68_v3  ;;  %v317_v8 = vmul.f32 %v3306_v40, %v72_v56  ;;  %v330_v28 = vmul.f32 %v3321_v50, %v85_v34 }
  0xa4   :  { %1077 = vmatmul.mubr.f32.gmra.mrb[4].mxu1 %v294_v29  ;;  %v353_v56 = vmul.f32 %v3306_v40, %v108_v54 }
  0xa5   :  { %1471 = vmatmul.mubr.f32.gmra.mrb[4].mxu0 %v298_v42  ;;  %1082 = vmatprep.mubr.f32.mxu1 %v304_v48  ;;  %v344_v42 = vmul.f32 %v3306_v40, %v99_v47  ;;  %v94_v48 = vld [vmem:[%s4400_s1 + $0x208] sm:$0xff] }
  0xa6   :  { %1476 = vmatprep.mubr.f32.mxu0 %v308_v51  ;;  %2155 = vmatpush1.bf16.msra.mxu1 %v2981_v31  ;;  %v322_v31 = vmul.f32 %v2873_v37, %v77_v6  ;;  %v2354_v30 = vpop.eup %2353  ;;  %v104_v51 = vld [vmem:[%s4400_s1 + $0x258] sm:$0xff]  ;;  %v339_v52 = vmul.f32 %v3321_v50, %v94_v48  ;;  %v157_v48 = vld [vmem:[%s4400_s1 + $0x400] sm:$0xff] }
  0xa7   :  { %2140 = vmatprep.subr.bf16.mxu1 %v2993_v36  ;;  %v80_v36 = vld [vmem:[%s4400_s1 + $0x198] sm:$0xff]  ;;  %v24_v38 = vadd.f32 1.0, %v2354_v30 }
  0xa8   :  { %1083 = vmatmul.mubr.f32.gmra.mrb[6].mxu1 %v303_v60  ;;  %v325_v27 = vmul.f32 %v3336_v58, %v80_v36  ;;  %v103_v60 = vld [vmem:[%s4400_s1 + $0x250] sm:$0xff]  ;;  %v112_v6 = vld [vmem:[%s4400_s1 + $0x298] sm:$0xff] }
  0xa9   :  { %1477 = vmatmul.mubr.f32.gmra.mrb[6].mxu0 %v307_v61  ;;  %1088 = vmatprep.mubr.f32.mxu1 %v313_v0  ;;  %2355 = vrcp.f32 %v24_v38  ;;  %v113_v61 = vld [vmem:[%s4400_s1 + $0x2a0] sm:$0xff] }
  0xaa   :  { %1482 = vmatprep.mubr.f32.mxu0 %v317_v8  ;;  %2156 = vmatpush1.bf16.msra.mxu1 %v3030_v55  ;;  %v331_v55 = vmul.f32 %v2873_v37, %v86_v24  ;;  %v117_v0 = vld [vmem:[%s4400_s1 + $0x2c0] sm:$0xff]  ;;  %v348_v8 = vmul.f32 %v3321_v50, %v103_v60  ;;  %v175_v60 = vld [vmem:[%s4400_s1 + $0x490] sm:$0xff] }
  0xab   :  { %2141 = vmatprep.subr.bf16.mxu1 %v3039_v59  ;;  %v89_v59 = vld [vmem:[%s4400_s1 + $0x1e0] sm:$0xff]  ;;  %v362_v1 = vmul.f32 %v3306_v40, %v117_v0 }
  0xac   :  { %1089 = vmatmul.mubr.f32.gmra.mrb[8].mxu1 %v312_v15  ;;  %v334_v29 = vmul.f32 %v3336_v58, %v89_v59  ;;  %v126_v15 = vld [vmem:[%s4400_s1 + $0x308] sm:$0xff]  ;;  %v121_v24 = vld [vmem:[%s4400_s1 + $0x2e0] sm:$0xff]  ;;  %v139_v59 = vld [vmem:[%s4400_s1 + $0x370] sm:$0xff] }
  0xad   :  { %1483 = vmatmul.mubr.f32.gmra.mrb[8].mxu0 %v316_v18  ;;  %1094 = vmatprep.mubr.f32.mxu1 %v322_v31  ;;  %v357_v18 = vmul.f32 %v3321_v50, %v112_v6  ;;  %v371_v36 = vmul.f32 %v3306_v40, %v126_v15  ;;  %v366_v30 = vmul.f32 %v3321_v50, %v121_v24  ;;  %v193_v6 = vld [vmem:[%s4400_s1 + $0x520] sm:$0xff] }
  0xae   :  { %1488 = vmatprep.mubr.f32.mxu0 %v326_v19  ;;  %2157 = vmatpush1.bf16.msra.mxu1 %v3076_v16  ;;  %v340_v16 = vmul.f32 %v2873_v37, %v95_v35  ;;  %v384_v35 = vmul.f32 %v3321_v50, %v139_v59  ;;  %v438_v7 = vmul.f32 %v3321_v50, %v193_v6  ;;  %v188_v6 = vld [vmem:[%s4400_s1 + $0x4f8] sm:$0xff] }
  0xaf   :  { %2142 = vmatprep.subr.bf16.mxu1 %v3085_v20  ;;  %v98_v20 = vld [vmem:[%s4400_s1 + $0x228] sm:$0xff] }
  0xb0   :  { %1095 = vmatmul.mubr.f32.gmra.mrb[10].mxu1 %v321_v26  ;;  %v343_v3 = vmul.f32 %v3336_v58, %v98_v20  ;;  %v402_v20 = vmul.f32 %v3321_v50, %v157_v48  ;;  %v152_v48 = vld [vmem:[%s4400_s1 + $0x3d8] sm:$0xff] }
  0xb1   :  { %1489 = vmatmul.mubr.f32.gmra.mrb[10].mxu0 %v325_v27  ;;  %1100 = vmatprep.mubr.f32.mxu1 %v331_v55 }
  0xb2   :  { %1494 = vmatprep.mubr.f32.mxu0 %v335_v32  ;;  %2158 = vmatpush1.bf16.msra.mxu1 %v3122_v44  ;;  %v349_v44 = vmul.f32 %v2873_v37, %v104_v51  ;;  %v2381_v32 = vmov 0.0  }
  0xb3   :  { %2143 = vmatprep.subr.bf16.mxu1 %v3131_v49  ;;  %v107_v49 = vld [vmem:[%s4400_s1 + $0x270] sm:$0xff]  ;;  %v2356_v19 = vpop.eup %2355 }
  0xb4   :  { %1101 = vmatmul.mubr.f32.gmra.mrb[12].mxu1 %v330_v28  ;;  %v352_v22 = vmul.f32 %v3336_v58, %v107_v49  ;;  %v3887_v25 = vrot.slane %v2356_v19, %v231_v14  ;;  %v140_v14 = vld [vmem:[%s4400_s1 + $0x378] sm:$0xff]  ;;  %v420_v49 = vmul.f32 %v3321_v50, %v175_v60  ;;  %v109_v19 = vld [vmem:[%s4400_s1 + $0x280] sm:$0xff]  ;;  %v170_v60 = vld [vmem:[%s4400_s1 + $0x468] sm:$0xff] }
  0xb5   :  { %1495 = vmatmul.mubr.f32.gmra.mrb[12].mxu0 %v334_v29  ;;  %1106 = vmatprep.mubr.f32.mxu1 %v340_v16  ;;  %v385_v34 = vmul.f32 %v2873_v37, %v140_v14  ;;  %v148_v28 = vld [vmem:[%s4400_s1 + $0x3b8] sm:$0xff] }
  0xb6   :  { %1500 = vmatprep.mubr.f32.mxu0 %v344_v42  ;;  %2159 = vmatpush1.bf16.msra.mxu1 %v3168_v5  ;;  %v358_v5 = vmul.f32 %v2873_v37, %v113_v61  ;;  %v282_v55 = vmul.f32 %v3887_v25, %v37_v9  ;;  %v393_v29 = vmul.f32 %v3321_v50, %v148_v28  ;;  %v220_v14 = vld [vmem:[%s4400_s1 + $0x5f8] sm:$0xff]  ;;  %v143_v28 = vld [vmem:[%s4400_s1 + $0x390] sm:$0xff] }
  0xb7   :  { %2144 = vmatprep.subr.bf16.mxu1 %v3177_v12  ;;  %v116_v12 = vld [vmem:[%s4400_s1 + $0x2b8] sm:$0xff]  ;;  %v354_v24 = vmul.f32 %v3887_v25, %v109_v19  ;;  %v199_v19 = vld [vmem:[%s4400_s1 + $0x550] sm:$0xff] }
  0xb8   :  { %1107 = vmatmul.mubr.f32.gmra.mrb[14].mxu1 %v339_v52  ;;  %v361_v31 = vmul.f32 %v3336_v58, %v116_v12  ;;  %v166_v52 = vld [vmem:[%s4400_s1 + $0x448] sm:$0xff]  ;;  %v203_v12 = vld [vmem:[%s4400_s1 + $0x570] sm:$0xff] }
  0xb9   :  { %1501 = vmatmul.mubr.f32.gmra.mrb[14].mxu0 %v343_v3  ;;  %1112 = vmatprep.mubr.f32.mxu1 %v349_v44  ;;  %v411_v3 = vmul.f32 %v3321_v50, %v166_v52  ;;  %v161_v52 = vld [vmem:[%s4400_s1 + $0x420] sm:$0xff] }
  0xba   :  { %1506 = vmatprep.mubr.f32.mxu0 %v353_v56  ;;  %2160 = vmatpush1.bf16.msra.mxu1 %v3214_v39  ;;  %v125_v39 = vld [vmem:[%s4400_s1 + $0x300] sm:$0xff] }
  0xbb   :  { %2145 = vmatprep.subr.bf16.mxu1 %v3223_v43  ;;  %v131_v43 = vld [vmem:[%s4400_s1 + $0x330] sm:$0xff]  ;;  %v370_v26 = vmul.f32 %v3336_v58, %v125_v39 }
  0xbc   :  { %1113 = vmatmul.mubr.f32.gmra.mrb[16].mxu1 %v348_v8  ;;  %v376_v27 = vmul.f32 %v2873_v37, %v131_v43  ;;  %v184_v8 = vld [vmem:[%s4400_s1 + $0x4d8] sm:$0xff]  ;;  %v211_v43 = vld [vmem:[%s4400_s1 + $0x5b0] sm:$0xff] }
  0xbd   :  { %1507 = vmatmul.mubr.f32.gmra.mrb[16].mxu0 %v352_v22  ;;  %1118 = vmatprep.mubr.f32.mxu1 %v358_v5  ;;  %v429_v22 = vmul.f32 %v3321_v50, %v184_v8  ;;  %v179_v8 = vld [vmem:[%s4400_s1 + $0x4b0] sm:$0xff] }
  0xbe   :  { %1512 = vmatprep.mubr.f32.mxu0 %v362_v1  ;;  %2161 = vmatpush1.bf16.msra.mxu1 %v3261_v2  ;;  %v130_v2 = vld [vmem:[%s4400_s1 + $0x328] sm:$0xff] }
  0xbf   :  { %2146 = vmatprep.subr.bf16.mxu1 %v3271_v13  ;;  %v375_v13 = vmul.f32 %v3321_v50, %v130_v2 }
  0xc0   :  { %1119 = vmatmul.mubr.f32.gmra.mrb[18].mxu1 %v357_v18  ;;  %v448_v18 = vmul.f32 %v2873_v37, %v203_v12  ;;  %v198_v12 = vld [vmem:[%s4400_s1 + $0x548] sm:$0xff] }
  0xc1   :  { %1513 = vmatmul.mubr.f32.gmra.mrb[18].mxu0 %v361_v31  ;;  %1124 = vmatprep.mubr.f32.mxu1 %v367_v11  ;;  %v202_v31 = vld [vmem:[%s4400_s1 + $0x568] sm:$0xff]  ;;  %v212_v11 = vld [vmem:[%s4400_s1 + $0x5b8] sm:$0xff] }
  0xc2   :  { %1518 = vmatprep.mubr.f32.mxu0 %v371_v36  ;;  %2162 = vmatpush1.bf16.msra.mxu1 %v3312_v45  ;;  %v46_v45 = vld [vmem:[%s4400_s1 + $0x88] sm:$0xff]  ;;  %v447_v36 = vmul.f32 %v3321_v50, %v202_v31  ;;  %v457_v39 = vmul.f32 %v2873_v37, %v212_v11  ;;  %v197_v31 = vld [vmem:[%s4400_s1 + $0x540] sm:$0xff]  ;;  %v207_v11 = vld [vmem:[%s4400_s1 + $0x590] sm:$0xff] }
  0xc3   :  { %2147 = vmatprep.subr.bf16.mxu1 %v3324_v53  ;;  %v149_v53 = vld [vmem:[%s4400_s1 + $0x3c0] sm:$0xff]  ;;  %v291_v47 = vmul.f32 %v3887_v25, %v46_v45  ;;  %v134_v45 = vld [vmem:[%s4400_s1 + $0x348] sm:$0xff] }
  0xc4   :  { %1125 = vmatmul.mubr.f32.gmra.mrb[20].mxu1 %v366_v30  ;;  %v394_v38 = vmul.f32 %v2873_v37, %v149_v53  ;;  %v118_v30 = vld [vmem:[%s4400_s1 + $0x2c8] sm:$0xff]  ;;  %v136_v53 = vld [vmem:[%s4400_s1 + $0x358] sm:$0xff] }
  0xc5   :  { %1519 = vmatmul.mubr.f32.gmra.mrb[20].mxu0 %v370_v26  ;;  %1130 = vmatprep.mubr.f32.mxu1 %v376_v27  ;;  %v221_v26 = vld [vmem:[%s4400_s1 + $0x600] sm:$0xff]  ;;  %v456_v27 = vmul.f32 %v3321_v50, %v211_v43  ;;  %v363_v2 = vmul.f32 %v3887_v25, %v118_v30  ;;  %v206_v43 = vld [vmem:[%s4400_s1 + $0x588] sm:$0xff]  ;;  %v208_v30 = vld [vmem:[%s4400_s1 + $0x598] sm:$0xff] }
  0xc6   :  { %1655 = vmatprep.mubr.f32.mxu0 %v2381_v32  ;;  %2163 = vmatpush1.bf16.msra.mxu1 %v3364_v17  ;;  %v55_v17 = vld [vmem:[%s4400_s1 + $0xd0] sm:$0xff]  ;;  %v466_v9 = vmul.f32 %v2873_v37, %v221_v26  ;;  %v216_v26 = vld [vmem:[%s4400_s1 + $0x5d8] sm:$0xff] }
  0xc7   :  { %2148 = vmatprep.subr.bf16.mxu1 %v3373_v23  ;;  %v158_v23 = vld [vmem:[%s4400_s1 + $0x408] sm:$0xff]  ;;  %v300_v16 = vmul.f32 %v3887_v25, %v55_v17  ;;  %v145_v17 = vld [vmem:[%s4400_s1 + $0x3a0] sm:$0xff] }
  0xc8   :  { %1131 = vmatmul.mubr.f32.gmra.mrb[22].mxu1 %v375_v13  ;;  %v403_v42 = vmul.f32 %v2873_v37, %v158_v23  ;;  %v127_v13 = vld [vmem:[%s4400_s1 + $0x310] sm:$0xff]  ;;  %v153_v23 = vld [vmem:[%s4400_s1 + $0x3e0] sm:$0xff] }
  0xc9   :  { %1851 = vmatmul.mubr.msk.f32.vlgmr.msra.gmra.mrb[0].mxu0 %vm736_vm0, %v282_v55  ;;  %1136 = vmatprep.mubr.f32.mxu1 %v385_v34  ;;  %v135_v55 = vld [vmem:[%s4400_s1 + $0x350] sm:$0xff]  ;;  %v465_v34 = vmul.f32 %v3321_v50, %v220_v14  ;;  %v372_v59 = vmul.f32 %v3887_v25, %v127_v13  ;;  %v379_v50 = vmul.f32 %v3336_v58, %v134_v45  ;;  %v217_v13 = vld [vmem:[%s4400_s1 + $0x5e0] sm:$0xff]  ;;  %v224_v45 = vld [vmem:[%s4400_s1 + $0x618] sm:$0xff] }
  0xca   :  { %1661 = vmatprep.mubr.f32.mxu0 %v2381_v32  ;;  %2164 = vmatpush1.bf16.msra.mxu1 %v3410_v57  ;;  %v64_v57 = vld [vmem:[%s4400_s1 + $0x118] sm:$0xff]  ;;  %v215_v14 = vld [vmem:[%s4400_s1 + $0x5d0] sm:$0xff] }
  0xcb   :  { %2149 = vmatprep.subr.bf16.mxu1 %v3419_v63  ;;  %v167_v63 = vld [vmem:[%s4400_s1 + $0x450] sm:$0xff]  ;;  %v309_v51 = vmul.f32 %v3887_v25, %v64_v57  ;;  %v154_v57 = vld [vmem:[%s4400_s1 + $0x3e8] sm:$0xff] }
  0xcc   :  { %1137 = vmatmul.mubr.f32.gmra.mrb[24].mxu1 %v384_v35  ;;  %v412_v54 = vmul.f32 %v2873_v37, %v167_v63  ;;  %v144_v35 = vld [vmem:[%s4400_s1 + $0x398] sm:$0xff]  ;;  %v162_v63 = vld [vmem:[%s4400_s1 + $0x428] sm:$0xff] }
  0xcd   :  { %1852 = vmatmul.mubr.msk.f32.gmra.mrb[2].mxu0 %vm736_vm0, %v291_v47  ;;  %1142 = vmatprep.mubr.f32.mxu1 %v394_v38  ;;  %v381_v47 = vmul.f32 %v3887_v25, %v136_v53  ;;  %v389_v38 = vmul.f32 %v3306_v40, %v144_v35  ;;  %v226_v53 = vld [vmem:[%s4400_s1 + $0x628] sm:$0xff]  ;;  %v469_v35 = vmul.f32 %v3336_v58, %v224_v45 }
  0xce   :  { %1667 = vmatprep.mubr.f32.mxu0 %v2381_v32  ;;  %2165 = vmatpush1.bf16.msra.mxu1 %v3456_v33  ;;  %v73_v33 = vld [vmem:[%s4400_s1 + $0x160] sm:$0xff] }
  0xcf   :  { %2150 = vmatprep.subr.bf16.mxu1 %v3465_v41  ;;  %v176_v41 = vld [vmem:[%s4400_s1 + $0x498] sm:$0xff]  ;;  %v318_v44 = vmul.f32 %v3887_v25, %v73_v33  ;;  %v163_v33 = vld [vmem:[%s4400_s1 + $0x430] sm:$0xff] }
  0xd0   :  { %1143 = vmatmul.mubr.f32.gmra.mrb[26].mxu1 %v393_v29  ;;  %v421_v56 = vmul.f32 %v2873_v37, %v176_v41  ;;  %v388_v29 = vmul.f32 %v3336_v58, %v143_v28  ;;  %v171_v41 = vld [vmem:[%s4400_s1 + $0x470] sm:$0xff] }
  0xd1   :  { %1853 = vmatmul.mubr.msk.f32.gmra.mrb[4].mxu0 %vm736_vm0, %v300_v16  ;;  %1148 = vmatprep.mubr.f32.mxu1 %v403_v42  ;;  %v390_v16 = vmul.f32 %v3887_v25, %v145_v17  ;;  %v398_v42 = vmul.f32 %v3306_v40, %v153_v23 }
  0xd2   :  { %1673 = vmatprep.mubr.f32.mxu0 %v2381_v32  ;;  %2166 = vmatpush1.bf16.msra.mxu1 %v3502_v10  ;;  %v82_v10 = vld [vmem:[%s4400_s1 + $0x1a8] sm:$0xff] }
  0xd3   :  { %2151 = vmatprep.subr.bf16.mxu1 %v3511_v21  ;;  %v185_v21 = vld [vmem:[%s4400_s1 + $0x4e0] sm:$0xff]  ;;  %v327_v61 = vmul.f32 %v3887_v25, %v82_v10  ;;  %v172_v10 = vld [vmem:[%s4400_s1 + $0x478] sm:$0xff] }
  0xd4   :  { %1149 = vmatmul.mubr.f32.gmra.mrb[28].mxu1 %v402_v20  ;;  %v430_v0 = vmul.f32 %v2873_v37, %v185_v21  ;;  %v397_v20 = vmul.f32 %v3336_v58, %v152_v48  ;;  %v180_v21 = vld [vmem:[%s4400_s1 + $0x4b8] sm:$0xff] }
  0xd5   :  { %1854 = vmatmul.mubr.msk.f32.gmra.mrb[6].mxu0 %vm736_vm0, %v309_v51  ;;  %1154 = vmatprep.mubr.f32.mxu1 %v412_v54  ;;  %v399_v51 = vmul.f32 %v3887_v25, %v154_v57  ;;  %v407_v54 = vmul.f32 %v3306_v40, %v162_v63 }
  0xd6   :  { %1679 = vmatprep.mubr.f32.mxu0 %v2381_v32  ;;  %2167 = vmatpush1.bf16.msra.mxu1 %v3548_v62  ;;  %v91_v62 = vld [vmem:[%s4400_s1 + $0x1f0] sm:$0xff] }
  0xd7   :  { %2152 = vmatprep.subr.bf16.mxu1 %v3557_v4  ;;  %v194_v4 = vld [vmem:[%s4400_s1 + $0x528] sm:$0xff]  ;;  %v336_v5 = vmul.f32 %v3887_v25, %v91_v62  ;;  %v181_v62 = vld [vmem:[%s4400_s1 + $0x4c0] sm:$0xff] }
  0xd8   :  { %1155 = vmatmul.mubr.f32.gmra.mrb[30].mxu1 %v411_v3  ;;  %v439_v1 = vmul.f32 %v2873_v37, %v194_v4  ;;  %v380_v37 = vmul.f32 %v3306_v40, %v135_v55  ;;  %v406_v3 = vmul.f32 %v3336_v58, %v161_v52  ;;  %v189_v4 = vld [vmem:[%s4400_s1 + $0x500] sm:$0xff] }
  0xd9   :  { %1855 = vmatmul.mubr.msk.f32.gmra.mrb[8].mxu0 %vm736_vm0, %v318_v44  ;;  %1160 = vmatprep.mubr.f32.mxu1 %v421_v56  ;;  %v408_v44 = vmul.f32 %v3887_v25, %v163_v33  ;;  %v416_v56 = vmul.f32 %v3306_v40, %v171_v41  ;;  %v225_v55 = vld [vmem:[%s4400_s1 + $0x620] sm:$0xff] }
  0xda   :  { %1685 = vmatprep.mubr.f32.mxu0 %v2381_v32  ;;  %2168 = vmatpush1.bf16.msra.mxu1 %v3588_v46  ;;  %v100_v46 = vld [vmem:[%s4400_s1 + $0x238] sm:$0xff] }
  0xdb   :  { %v345_v15 = vmul.f32 %v3887_v25, %v100_v46  ;;  %v190_v46 = vld [vmem:[%s4400_s1 + $0x508] sm:$0xff]  ;;  %s2382_s1 = smov [#allocation2]  }
  0xdc   :  { %1161 = vmatmul.mubr.f32.gmra.mrb[32].mxu1 %v420_v49  ;;  %v415_v49 = vmul.f32 %v3336_v58, %v170_v60  ;;  %s1838_s8 = sshll.u32 %s2382_s1, 4  ;;  %s1839_s8 = int_to_ptr.vmem [resolvable:$true] %s1838_s8 }
  0xdd   :  { %1856 = vmatmul.mubr.msk.f32.gmra.mrb[10].mxu0 %vm736_vm0, %v327_v61  ;;  %1166 = vmatprep.mubr.f32.mxu1 %v430_v0  ;;  %v417_v61 = vmul.f32 %v3887_v25, %v172_v10  ;;  %v425_v0 = vmul.f32 %v3306_v40, %v180_v21  ;;  %s2357_s9 = scalar_lea.vmem %s1839_s8, 5632  ;;  %p2362_p1 = scmp.lt.s32.totalorder %s1839_s8, %s1839_s8 }
  0xde   :  { %1691 = vmatprep.mubr.f32.mxu0 %v2381_v32  ;;  %p2358_p0 = scmp.ne.s32.totalorder %s1839_s8, %s2357_s9  ;;  %p2363_p2 = scmp.lt.s32.totalorder %s2357_s9, %s2357_s9 }
  0xe0   :  { %1167 = vmatmul.mubr.f32.gmra.mrb[34].mxu1 %v429_v22  ;;  %v424_v22 = vmul.f32 %v3336_v58, %v179_v8  ;;  %p2364_p3 = por %p2363_p2, %p2362_p1 }
  0xe1   :  { %1857 = vmatmul.mubr.msk.f32.gmra.mrb[12].mxu0 %vm736_vm0, %v336_v5  ;;  %1172 = vmatprep.mubr.f32.mxu1 %v439_v1  ;;  %v426_v5 = vmul.f32 %v3887_v25, %v181_v62  ;;  %v434_v1 = vmul.f32 %v3306_v40, %v189_v4 }
  0xe2   :  { %1697 = vmatprep.mubr.f32.mxu0 %v2381_v32  ;;  %p2365_p4 = pnand %p2364_p3, %p2358_p0 }
  0xe4   :  { %1173 = vmatmul.mubr.f32.gmra.mrb[36].mxu1 %v438_v7  ;;  %v433_v7 = vmul.f32 %v3336_v58, %v188_v6 }
  0xe5   :  { %1858 = vmatmul.mubr.msk.f32.gmra.mrb[14].mxu0 %vm736_vm0, %v345_v15  ;;  %1178 = vmatprep.mubr.f32.mxu1 %v448_v18  ;;  %v435_v15 = vmul.f32 %v3887_v25, %v190_v46  ;;  %v443_v18 = vmul.f32 %v3306_v40, %v198_v12 }
  0xe6   :  { %1703 = vmatprep.mubr.f32.mxu0 %v2381_v32 }
  0xe8   :  { %1179 = vmatmul.mubr.f32.gmra.mrb[38].mxu1 %v447_v36  ;;  %v442_v36 = vmul.f32 %v3336_v58, %v197_v31 }
  0xe9   :  { %1859 = vmatmul.mubr.msk.f32.gmra.mrb[16].mxu0 %vm736_vm0, %v354_v24  ;;  %1184 = vmatprep.mubr.f32.mxu1 %v457_v39  ;;  %v444_v24 = vmul.f32 %v3887_v25, %v199_v19  ;;  %v452_v39 = vmul.f32 %v3306_v40, %v207_v11 }
  0xea   :  { %1709 = vmatprep.mubr.f32.mxu0 %v2381_v32 }
  0xec   :  { %1185 = vmatmul.mubr.f32.gmra.mrb[40].mxu1 %v456_v27  ;;  %v451_v27 = vmul.f32 %v3336_v58, %v206_v43 }
  0xed   :  { %1860 = vmatmul.mubr.msk.f32.gmra.mrb[18].mxu0 %vm736_vm0, %v363_v2  ;;  %1190 = vmatprep.mubr.f32.mxu1 %v466_v9  ;;  %v453_v2 = vmul.f32 %v3887_v25, %v208_v30  ;;  %v461_v9 = vmul.f32 %v3306_v40, %v216_v26 }
  0xee   :  { %1715 = vmatprep.mubr.f32.mxu0 %v2381_v32 }
  0xf0   :  { %1191 = vmatmul.mubr.f32.gmra.mrb[42].mxu1 %v465_v34  ;;  %v460_v34 = vmul.f32 %v3336_v58, %v215_v14 }
  0xf1   :  { %1861 = vmatmul.mubr.msk.f32.gmra.mrb[20].mxu0 %vm736_vm0, %v372_v59  ;;  %1524 = vmatprep.mubr.f32.mxu1 %v380_v37  ;;  %v462_v59 = vmul.f32 %v3887_v25, %v217_v13  ;;  %v470_v37 = vmul.f32 %v3306_v40, %v225_v55 }
  0xf2   :  { %1721 = vmatprep.mubr.f32.mxu0 %v2381_v32 }
  0xf4   :  { %1525 = vmatmul.mubr.f32.vlgmr.msra.gmra.mrb[44].mxu1 %v379_v50  ;;  %v471_v50 = vmul.f32 %v3887_v25, %v226_v53 }
  0xf5   :  { %1862 = vmatmul.mubr.msk.f32.gmra.mrb[44].mxu0 %vm736_vm0, %v381_v47  ;;  %1530 = vmatprep.mubr.f32.mxu1 %v389_v38 }
  0xf6   :  { %1727 = vmatprep.mubr.f32.mxu0 %v2381_v32 }
  0xf8   :  { %1531 = vmatmul.mubr.f32.gmra.mrb[46].mxu1 %v388_v29 }
  0xf9   :  { %1863 = vmatmul.mubr.msk.f32.gmra.mrb[46].mxu0 %vm736_vm0, %v390_v16  ;;  %1536 = vmatprep.mubr.f32.mxu1 %v398_v42 }
  0xfa   :  { %1733 = vmatprep.mubr.f32.mxu0 %v2381_v32 }
  0xfc   :  { %1537 = vmatmul.mubr.f32.gmra.mrb[48].mxu1 %v397_v20 }
  0xfd   :  { %1864 = vmatmul.mubr.msk.f32.gmra.mrb[48].mxu0 %vm736_vm0, %v399_v51  ;;  %1542 = vmatprep.mubr.f32.mxu1 %v407_v54 }
  0xfe   :  { %1739 = vmatprep.mubr.f32.mxu0 %v2381_v32 }
 0x100   :  { %1543 = vmatmul.mubr.f32.gmra.mrb[50].mxu1 %v406_v3 }
 0x101   :  { %1865 = vmatmul.mubr.msk.f32.gmra.mrb[50].mxu0 %vm736_vm0, %v408_v44  ;;  %1548 = vmatprep.mubr.f32.mxu1 %v416_v56 }
 0x102   :  { %1745 = vmatprep.mubr.f32.mxu0 %v2381_v32 }
 0x104   :  { %1549 = vmatmul.mubr.f32.gmra.mrb[52].mxu1 %v415_v49 }
 0x105   :  { %1866 = vmatmul.mubr.msk.f32.gmra.mrb[52].mxu0 %vm736_vm0, %v417_v61  ;;  %1554 = vmatprep.mubr.f32.mxu1 %v425_v0 }
 0x106   :  { %1751 = vmatprep.mubr.f32.mxu0 %v2381_v32 }
 0x108   :  { %1555 = vmatmul.mubr.f32.gmra.mrb[54].mxu1 %v424_v22 }
 0x109   :  { %1867 = vmatmul.mubr.msk.f32.gmra.mrb[54].mxu0 %vm736_vm0, %v426_v5  ;;  %1560 = vmatprep.mubr.f32.mxu1 %v434_v1 }
 0x10a   :  { %1757 = vmatprep.mubr.f32.mxu0 %v2381_v32 }
 0x10c   :  { %1561 = vmatmul.mubr.f32.gmra.mrb[56].mxu1 %v433_v7 }
 0x10d   :  { %1868 = vmatmul.mubr.msk.f32.gmra.mrb[56].mxu0 %vm736_vm0, %v435_v15  ;;  %1566 = vmatprep.mubr.f32.mxu1 %v443_v18 }
 0x10e   :  { %1763 = vmatprep.mubr.f32.mxu0 %v2381_v32 }
 0x110   :  { %1567 = vmatmul.mubr.f32.gmra.mrb[58].mxu1 %v442_v36 }
 0x111   :  { %1869 = vmatmul.mubr.msk.f32.gmra.mrb[58].mxu0 %vm736_vm0, %v444_v24  ;;  %1572 = vmatprep.mubr.f32.mxu1 %v452_v39 }
 0x112   :  { %1769 = vmatprep.mubr.f32.mxu0 %v2381_v32 }
 0x114   :  { %1573 = vmatmul.mubr.f32.gmra.mrb[60].mxu1 %v451_v27 }
 0x115   :  { %1870 = vmatmul.mubr.msk.f32.gmra.mrb[60].mxu0 %vm736_vm0, %v453_v2  ;;  %1578 = vmatprep.mubr.f32.mxu1 %v461_v9 }
 0x116   :  { %1775 = vmatprep.mubr.f32.mxu0 %v2381_v32 }
 0x118   :  { %1579 = vmatmul.mubr.f32.gmra.mrb[62].mxu1 %v460_v34 }
 0x119   :  { %1871 = vmatmul.mubr.msk.f32.gmra.mrb[62].mxu0 %vm736_vm0, %v462_v59  ;;  %1584 = vmatprep.mubr.f32.mxu1 %v470_v37 }
 0x11a   :  { %1781 = vmatprep.mubr.f32.mxu0 %v2381_v32 }
 0x11c   :  { %1585 = vmatmul.mubr.f32.gmra.mrb[64].mxu1 %v469_v35 }
 0x11d   :  { %1872 = vmatmul.mubr.msk.f32.gmra.mrb[64].mxu0 %vm736_vm0, %v471_v50 }
 0x144   :  { %v1329_v40 = vpop.f32.mrb[22].mxu0 }
 0x145   :  { %v1331_v47 = vpop.f32.mrb[23].mxu0 }
 0x148   :  { %v1335_v38 = vpop.f32.mrb[24].mxu0 }
 0x149   :  { %v1337_v28 = vpop.f32.mrb[25].mxu0 }
 0x14c   :  { %v4209_v17 = vpop.f32.mrb[26].mxu0 }
 0x14d   :  { %v4211_v23 = vpop.f32.mrb[27].mxu0 }
 0x150   :  { %v4213_v29 = vpop.f32.mrb[28].mxu0 }
 0x151   :  { %v4215_v16 = vpop.f32.mrb[29].mxu0 }
 0x154   :  { %v4217_v58 = vpop.f32.mrb[30].mxu0 }
 0x155   :  { %v4219_v25 = vpop.f32.mrb[31].mxu0 }
 0x158   :  { %v4221_v32 = vpop.f32.mrb[32].mxu0 }
 0x159   :  { %v4223_v42 = vpop.f32.mrb[33].mxu0 }
 0x15c   :  { %v4225_v48 = vpop.f32.mrb[34].mxu0 }
 0x15d   :  { %v4227_v57 = vpop.f32.mrb[35].mxu0 }
 0x160   :  { %v4229_v63 = vpop.f32.mrb[36].mxu0 }
 0x161   :  { %v4231_v20 = vpop.f32.mrb[37].mxu0 }
 0x164   :  { %v4233_v51 = vpop.f32.mrb[38].mxu0 }
 0x165   :  { %v4235_v54 = vpop.f32.mrb[39].mxu0 }
 0x168   :  { %v4237_v52 = vpop.f32.mrb[40].mxu0 }
 0x169   :  { %v4239_v33 = vpop.f32.mrb[41].mxu0 }
 0x16c   :  { %v4241_v41 = vpop.f32.mrb[42].mxu0 }
 0x16d   :  { %v4243_v3 = vpop.f32.mrb[43].mxu0 }
 0x16f   :  { %v1066_v44 = vpop.f32.mrb[0].mxu1 }
 0x170   :  { %v1068_v56 = vpop.f32.mrb[1].mxu1 }
 0x173   :  { %v1072_v60 = vpop.f32.mrb[2].mxu1 }
 0x174   :  { %v1074_v10 = vpop.f32.mrb[3].mxu1 }
 0x177   :  { %v1078_v21 = vpop.f32.mrb[4].mxu1 }
 0x178   :  { %v1080_v49 = vpop.f32.mrb[5].mxu1 }
 0x17b   :  { %v1084_v61 = vpop.f32.mrb[6].mxu1 }
 0x17c   :  { %v1086_v0 = vpop.f32.mrb[7].mxu1 }
 0x17f   :  { %v1090_v8 = vpop.f32.mrb[8].mxu1 }
 0x180   :  { %v1092_v62 = vpop.f32.mrb[9].mxu1 }
 0x183   :  { %v4245_v4 = vpop.f32.mrb[10].mxu1 }
 0x184   :  { %v4247_v22 = vpop.f32.mrb[11].mxu1 }
 0x187   :  { %v4249_v5 = vpop.f32.mrb[12].mxu1 }
 0x188   :  { %v4251_v1 = vpop.f32.mrb[13].mxu1 }
 0x18b   :  { %v4253_v6 = vpop.f32.mrb[14].mxu1 }
 0x18c   :  { %v4255_v46 = vpop.f32.mrb[15].mxu1 }
 0x18f   :  { %v4257_v12 = vpop.f32.mrb[16].mxu1 }
 0x190   :  { %v4259_v7 = vpop.f32.mrb[17].mxu1 }
 0x193   :  { %v4261_v15 = vpop.f32.mrb[18].mxu1 }
 0x194   :  { %v4263_v18 = vpop.f32.mrb[19].mxu1 }
 0x197   :  { %v4265_v31 = vpop.f32.mrb[20].mxu1 }
 0x198   :  { %v4267_v19 = vpop.f32.mrb[21].mxu1 }
 0x19b   :  { %v1132_v11 = vpop.f32.mrb[22].mxu1 }
 0x19c   :  { %v1657_v36 = vpop.f32.mrb[0].mxu0  ;;  %v4269_v24 = vadd.f32 %v1329_v40, %v1132_v11  ;;  %v1134_v43 = vpop.f32.mrb[23].mxu1 }
 0x19d   :  { %v2169_v39 = vadd.f32 %v1657_v36, %v1066_v44  ;;  %v1659_v30 = vpop.f32.mrb[1].mxu0  ;;  %v4271_v26 = vadd.f32 %v1331_v47, %v1134_v43 }
 0x19e   :  { %v2170_v27 = vadd.f32 %v1659_v30, %v1068_v56 }
 0x19f   :  { %1788 = vst [vmem:[#allocation2] sm:$0xff] %v2169_v39  ;;  %v1138_v2 = vpop.f32.mrb[24].mxu1 }
 0x1a0   :  { %1790 = vst.msk [vmem:[#allocation2 + $0x8] sm:$0xff] %vm1789_vm1, %v2170_v27  ;;  %v1663_v9 = vpop.f32.mrb[2].mxu0  ;;  %v4274_v14 = vadd.f32 %v1335_v38, %v1138_v2  ;;  %v1140_v55 = vpop.f32.mrb[25].mxu1 }
 0x1a1   :  { %v2171_v13 = vadd.f32 %v1663_v9, %v1072_v60  ;;  %v1665_v34 = vpop.f32.mrb[3].mxu0  ;;  %v4276_v59 = vadd.f32 %v1337_v28, %v1140_v55 }
 0x1a2   :  { %v2172_v37 = vadd.f32 %v1665_v34, %v1074_v10 }
 0x1a3   :  { %1791 = vst [vmem:[#allocation2 + $0x10] sm:$0xff] %v2171_v13  ;;  %v1144_v45 = vpop.f32.mrb[26].mxu1 }
 0x1a4   :  { %1792 = vst.msk [vmem:[#allocation2 + $0x18] sm:$0xff] %vm1789_vm1, %v2172_v37  ;;  %v1669_v53 = vpop.f32.mrb[4].mxu0  ;;  %v4280_v35 = vadd.f32 %v4209_v17, %v1144_v45  ;;  %v1146_v40 = vpop.f32.mrb[27].mxu1 }
 0x1a5   :  { %v2173_v50 = vadd.f32 %v1669_v53, %v1078_v21  ;;  %v1671_v47 = vpop.f32.mrb[5].mxu0  ;;  %v4283_v38 = vadd.f32 %v4211_v23, %v1146_v40 }
 0x1a6   :  { %v2174_v44 = vadd.f32 %v1671_v47, %v1080_v49 }
 0x1a7   :  { %1793 = vst [vmem:[#allocation2 + $0x20] sm:$0xff] %v2173_v50  ;;  %v1150_v28 = vpop.f32.mrb[28].mxu1 }
 0x1a8   :  { %1794 = vst.msk [vmem:[#allocation2 + $0x28] sm:$0xff] %vm1789_vm1, %v2174_v44  ;;  %v1675_v56 = vpop.f32.mrb[6].mxu0  ;;  %v4287_v60 = vadd.f32 %v4213_v29, %v1150_v28  ;;  %v1152_v11 = vpop.f32.mrb[29].mxu1 }
 0x1a9   :  { %v2175_v10 = vadd.f32 %v1675_v56, %v1084_v61  ;;  %v1677_v36 = vpop.f32.mrb[7].mxu0  ;;  %v4290_v17 = vadd.f32 %v4215_v16, %v1152_v11 }
 0x1aa   :  { %v2176_v21 = vadd.f32 %v1677_v36, %v1086_v0 }
 0x1ab   :  { %1795 = vst [vmem:[#allocation2 + $0x30] sm:$0xff] %v2175_v10  ;;  %v1156_v23 = vpop.f32.mrb[30].mxu1 }
 0x1ac   :  { %1796 = vst.msk [vmem:[#allocation2 + $0x38] sm:$0xff] %vm1789_vm1, %v2176_v21  ;;  %v1681_v49 = vpop.f32.mrb[8].mxu0  ;;  %v4294_v39 = vadd.f32 %v4217_v58, %v1156_v23  ;;  %v1158_v30 = vpop.f32.mrb[31].mxu1 }
 0x1ad   :  { %v2177_v43 = vadd.f32 %v1681_v49, %v1090_v8  ;;  %v1683_v27 = vpop.f32.mrb[9].mxu0  ;;  %v4297_v29 = vadd.f32 %v4219_v25, %v1158_v30 }
 0x1ae   :  { %v2178_v61 = vadd.f32 %v1683_v27, %v1092_v62 }
 0x1af   :  { %1797 = vst [vmem:[#allocation2 + $0x40] sm:$0xff] %v2177_v43  ;;  %v1162_v16 = vpop.f32.mrb[32].mxu1 }
 0x1b0   :  { %1798 = vst.msk [vmem:[#allocation2 + $0x48] sm:$0xff] %vm1789_vm1, %v2178_v61  ;;  %v1687_v0 = vpop.f32.mrb[10].mxu0  ;;  %v4301_v2 = vadd.f32 %v4221_v32, %v1162_v16  ;;  %v1164_v13 = vpop.f32.mrb[33].mxu1 }
 0x1b1   :  { %v2179_v9 = vadd.f32 %v1687_v0, %v4245_v4  ;;  %v1689_v58 = vpop.f32.mrb[11].mxu0  ;;  %v4305_v8 = vadd.f32 %v4223_v42, %v1164_v13 }
 0x1b2   :  { %v2180_v55 = vadd.f32 %v1689_v58, %v4247_v22 }
 0x1b3   :  { %1799 = vst [vmem:[#allocation2 + $0x50] sm:$0xff] %v2179_v9  ;;  %v1168_v25 = vpop.f32.mrb[34].mxu1 }
 0x1b4   :  { %1800 = vst.msk [vmem:[#allocation2 + $0x58] sm:$0xff] %vm1789_vm1, %v2180_v55  ;;  %v1693_v62 = vpop.f32.mrb[12].mxu0  ;;  %v4310_v34 = vadd.f32 %v4225_v48, %v1168_v25  ;;  %v1170_v37 = vpop.f32.mrb[35].mxu1 }
 0x1b5   :  { %v2181_v32 = vadd.f32 %v1693_v62, %v4249_v5  ;;  %v1695_v45 = vpop.f32.mrb[13].mxu0  ;;  %v4314_v4 = vadd.f32 %v4227_v57, %v1170_v37 }
 0x1b6   :  { %v2182_v42 = vadd.f32 %v1695_v45, %v4251_v1 }
 0x1b7   :  { %1801 = vst [vmem:[#allocation2 + $0x60] sm:$0xff] %v2181_v32  ;;  %v1174_v22 = vpop.f32.mrb[36].mxu1 }
 0x1b8   :  { %1802 = vst.msk [vmem:[#allocation2 + $0x68] sm:$0xff] %vm1789_vm1, %v2182_v42  ;;  %v1699_v53 = vpop.f32.mrb[14].mxu0  ;;  %v4319_v50 = vadd.f32 %v4229_v63, %v1174_v22  ;;  %v1176_v40 = vpop.f32.mrb[37].mxu1 }
 0x1b9   :  { %v2183_v48 = vadd.f32 %v1699_v53, %v4253_v6  ;;  %v1701_v47 = vpop.f32.mrb[15].mxu0  ;;  %v4323_v5 = vadd.f32 %v4231_v20, %v1176_v40 }
 0x1ba   :  { %v2184_v57 = vadd.f32 %v1701_v47, %v4255_v46 }
 0x1bb   :  { %1803 = vst [vmem:[#allocation2 + $0x70] sm:$0xff] %v2183_v48  ;;  %v1180_v1 = vpop.f32.mrb[38].mxu1 }
 0x1bc   :  { %1804 = vst.msk [vmem:[#allocation2 + $0x78] sm:$0xff] %vm1789_vm1, %v2184_v57  ;;  %v1705_v44 = vpop.f32.mrb[16].mxu0  ;;  %v4328_v28 = vadd.f32 %v4233_v51, %v1180_v1  ;;  %v1182_v56 = vpop.f32.mrb[39].mxu1 }
 0x1bd   :  { %v2185_v63 = vadd.f32 %v1705_v44, %v4257_v12  ;;  %v1707_v10 = vpop.f32.mrb[17].mxu0  ;;  %v4332_v6 = vadd.f32 %v4235_v54, %v1182_v56 }
 0x1be   :  { %v2186_v20 = vadd.f32 %v1707_v10, %v4259_v7 }
 0x1bf   :  { %1805 = vst [vmem:[#allocation2 + $0x80] sm:$0xff] %v2185_v63  ;;  %v1186_v46 = vpop.f32.mrb[40].mxu1 }
 0x1c0   :  { %1806 = vst.msk [vmem:[#allocation2 + $0x88] sm:$0xff] %vm1789_vm1, %v2186_v20  ;;  %v1711_v11 = vpop.f32.mrb[18].mxu0  ;;  %v4337_v36 = vadd.f32 %v4237_v52, %v1186_v46  ;;  %v1188_v21 = vpop.f32.mrb[41].mxu1 }
 0x1c1   :  { %v2187_v51 = vadd.f32 %v1711_v11, %v4261_v15  ;;  %v1713_v23 = vpop.f32.mrb[19].mxu0  ;;  %v4341_v12 = vadd.f32 %v4239_v33, %v1188_v21 }
 0x1c2   :  { %v2188_v54 = vadd.f32 %v1713_v23, %v4263_v18 }
 0x1c3   :  { %1807 = vst [vmem:[#allocation2 + $0x90] sm:$0xff] %v2187_v51  ;;  %v1192_v7 = vpop.f32.mrb[42].mxu1 }
 0x1c4   :  { %1808 = vst.msk [vmem:[#allocation2 + $0x98] sm:$0xff] %vm1789_vm1, %v2188_v54  ;;  %v1717_v49 = vpop.f32.mrb[20].mxu0  ;;  %v4346_v43 = vadd.f32 %v4241_v41, %v1192_v7  ;;  %v1194_v30 = vpop.f32.mrb[43].mxu1 }
 0x1c5   :  { %v2189_v52 = vadd.f32 %v1717_v49, %v4265_v31  ;;  %v1719_v27 = vpop.f32.mrb[21].mxu0  ;;  %v4350_v15 = vadd.f32 %v4243_v3, %v1194_v30 }
 0x1c6   :  { %v2190_v33 = vadd.f32 %v1719_v27, %v4267_v19 }
 0x1c7   :  { %1809 = vst [vmem:[#allocation2 + $0xa0] sm:$0xff] %v2189_v52  ;;  %v1526_v18 = vpop.f32.mrb[44].mxu1 }
 0x1c8   :  { %1810 = vst.msk [vmem:[#allocation2 + $0xa8] sm:$0xff] %vm1789_vm1, %v2190_v33  ;;  %v1723_v61 = vpop.f32.mrb[44].mxu0  ;;  %v2192_v16 = vadd.f32 %v4269_v24, %v1526_v18  ;;  %v1528_v0 = vpop.f32.mrb[45].mxu1 }
 0x1c9   :  { %v1725_v9 = vpop.f32.mrb[45].mxu0  ;;  %v2195_v41 = vadd.f32 %v4271_v26, %v1528_v0 }
 0x1ca   :  { %v2193_v13 = vadd.f32 %v2192_v16, %v1723_v61 }
 0x1cb   :  { %v2196_v31 = vadd.f32 %v2195_v41, %v1725_v9  ;;  %v1532_v58 = vpop.f32.mrb[46].mxu1 }
 0x1cc   :  { %v1729_v55 = vpop.f32.mrb[46].mxu0  ;;  %1811 = vst [vmem:[#allocation2 + $0xb0] sm:$0xff] %v2193_v13  ;;  %v2198_v3 = vadd.f32 %v4274_v14, %v1532_v58  ;;  %v1534_v25 = vpop.f32.mrb[47].mxu1 }
 0x1cd   :  { %v1731_v19 = vpop.f32.mrb[47].mxu0  ;;  %1812 = vst.msk [vmem:[#allocation2 + $0xb8] sm:$0xff] %vm1789_vm1, %v2196_v31  ;;  %v2201_v62 = vadd.f32 %v4276_v59, %v1534_v25 }
 0x1ce   :  { %v2199_v32 = vadd.f32 %v2198_v3, %v1729_v55 }
 0x1cf   :  { %v2202_v37 = vadd.f32 %v2201_v62, %v1731_v19  ;;  %v1538_v24 = vpop.f32.mrb[48].mxu1 }
 0x1d0   :  { %v1735_v45 = vpop.f32.mrb[48].mxu0  ;;  %1813 = vst [vmem:[#allocation2 + $0xc0] sm:$0xff] %v2199_v32  ;;  %v2204_v26 = vadd.f32 %v4280_v35, %v1538_v24  ;;  %v1540_v42 = vpop.f32.mrb[49].mxu1 }
 0x1d1   :  { %v1737_v22 = vpop.f32.mrb[49].mxu0  ;;  %1814 = vst.msk [vmem:[#allocation2 + $0xc8] sm:$0xff] %vm1789_vm1, %v2202_v37  ;;  %v2207_v53 = vadd.f32 %v4283_v38, %v1540_v42 }
 0x1d2   :  { %v2205_v14 = vadd.f32 %v2204_v26, %v1735_v45 }
 0x1d3   :  { %v2208_v48 = vadd.f32 %v2207_v53, %v1737_v22  ;;  %v1544_v40 = vpop.f32.mrb[50].mxu1 }
 0x1d4   :  { %v1741_v47 = vpop.f32.mrb[50].mxu0  ;;  %1815 = vst [vmem:[#allocation2 + $0xd0] sm:$0xff] %v2205_v14  ;;  %v2210_v59 = vadd.f32 %v4287_v60, %v1544_v40  ;;  %v1546_v57 = vpop.f32.mrb[51].mxu1 }
 0x1d5   :  { %v1743_v1 = vpop.f32.mrb[51].mxu0  ;;  %1816 = vst.msk [vmem:[#allocation2 + $0xd8] sm:$0xff] %vm1789_vm1, %v2208_v48  ;;  %v2213_v44 = vadd.f32 %v4290_v17, %v1546_v57 }
 0x1d6   :  { %v2211_v35 = vadd.f32 %v2210_v59, %v1741_v47 }
 0x1d7   :  { %v2214_v63 = vadd.f32 %v2213_v44, %v1743_v1  ;;  %v1550_v56 = vpop.f32.mrb[52].mxu1 }
 0x1d8   :  { %v1747_v10 = vpop.f32.mrb[52].mxu0  ;;  %1817 = vst [vmem:[#allocation2 + $0xe0] sm:$0xff] %v2211_v35  ;;  %v2216_v38 = vadd.f32 %v4294_v39, %v1550_v56  ;;  %v1552_v20 = vpop.f32.mrb[53].mxu1 }
 0x1d9   :  { %v1749_v46 = vpop.f32.mrb[53].mxu0  ;;  %1818 = vst.msk [vmem:[#allocation2 + $0xe8] sm:$0xff] %vm1789_vm1, %v2214_v63  ;;  %v2219_v11 = vadd.f32 %v4297_v29, %v1552_v20 }
 0x1da   :  { %v2217_v60 = vadd.f32 %v2216_v38, %v1747_v10 }
 0x1db   :  { %v2220_v51 = vadd.f32 %v2219_v11, %v1749_v46  ;;  %v1556_v21 = vpop.f32.mrb[54].mxu1 }
 0x1dc   :  { %v1753_v23 = vpop.f32.mrb[54].mxu0  ;;  %1819 = vst [vmem:[#allocation2 + $0xf0] sm:$0xff] %v2217_v60  ;;  %v2222_v17 = vadd.f32 %v4301_v2, %v1556_v21  ;;  %v1558_v54 = vpop.f32.mrb[55].mxu1 }
 0x1dd   :  { %v1755_v7 = vpop.f32.mrb[55].mxu0  ;;  %1820 = vst.msk [vmem:[#allocation2 + $0xf8] sm:$0xff] %vm1789_vm1, %v2220_v51  ;;  %v2225_v49 = vadd.f32 %v4305_v8, %v1558_v54 }
 0x1de   :  { %v2223_v39 = vadd.f32 %v2222_v17, %v1753_v23 }
 0x1df   :  { %v2226_v52 = vadd.f32 %v2225_v49, %v1755_v7  ;;  %v1562_v30 = vpop.f32.mrb[56].mxu1 }
 0x1e0   :  { %v1759_v27 = vpop.f32.mrb[56].mxu0  ;;  %1821 = vst [vmem:[#allocation2 + $0x100] sm:$0xff] %v2223_v39  ;;  %v2228_v29 = vadd.f32 %v4310_v34, %v1562_v30  ;;  %v1564_v33 = vpop.f32.mrb[57].mxu1 }
 0x1e1   :  { %v1761_v18 = vpop.f32.mrb[57].mxu0  ;;  %1822 = vst.msk [vmem:[#allocation2 + $0x108] sm:$0xff] %vm1789_vm1, %v2226_v52  ;;  %v2231_v61 = vadd.f32 %v4314_v4, %v1564_v33 }
 0x1e2   :  { %v2229_v2 = vadd.f32 %v2228_v29, %v1759_v27 }
 0x1e3   :  { %v2232_v16 = vadd.f32 %v2231_v61, %v1761_v18  ;;  %v1568_v0 = vpop.f32.mrb[58].mxu1 }
 0x1e4   :  { %v1765_v9 = vpop.f32.mrb[58].mxu0  ;;  %1823 = vst [vmem:[#allocation2 + $0x110] sm:$0xff] %v2229_v2  ;;  %v2234_v8 = vadd.f32 %v4319_v50, %v1568_v0  ;;  %v1570_v41 = vpop.f32.mrb[59].mxu1 }
 0x1e5   :  { %v1767_v13 = vpop.f32.mrb[59].mxu0  ;;  %1824 = vst.msk [vmem:[#allocation2 + $0x118] sm:$0xff] %vm1789_vm1, %v2232_v16  ;;  %v2237_v31 = vadd.f32 %v4323_v5, %v1570_v41 }
 0x1e6   :  { %v2235_v34 = vadd.f32 %v2234_v8, %v1765_v9 }
 0x1e7   :  { %v2238_v58 = vadd.f32 %v2237_v31, %v1767_v13  ;;  %v1574_v55 = vpop.f32.mrb[60].mxu1 }
 0x1e8   :  { %v1771_v3 = vpop.f32.mrb[60].mxu0  ;;  %1825 = vst [vmem:[#allocation2 + $0x120] sm:$0xff] %v2235_v34  ;;  %v2240_v4 = vadd.f32 %v4328_v28, %v1574_v55  ;;  %v1576_v25 = vpop.f32.mrb[61].mxu1 }
 0x1e9   :  { %v1773_v19 = vpop.f32.mrb[61].mxu0  ;;  %1826 = vst.msk [vmem:[#allocation2 + $0x128] sm:$0xff] %vm1789_vm1, %v2238_v58  ;;  %v2243_v62 = vadd.f32 %v4332_v6, %v1576_v25 }
 0x1ea   :  { %v2241_v50 = vadd.f32 %v2240_v4, %v1771_v3 }
 0x1eb   :  { %v2244_v32 = vadd.f32 %v2243_v62, %v1773_v19  ;;  %v1580_v37 = vpop.f32.mrb[62].mxu1 }
 0x1ec   :  { %v1777_v24 = vpop.f32.mrb[62].mxu0  ;;  %1827 = vst [vmem:[#allocation2 + $0x130] sm:$0xff] %v2241_v50  ;;  %v2246_v5 = vadd.f32 %v4337_v36, %v1580_v37  ;;  %v1582_v45 = vpop.f32.mrb[63].mxu1 }
 0x1ed   :  { %v1779_v26 = vpop.f32.mrb[63].mxu0  ;;  %1828 = vst.msk [vmem:[#allocation2 + $0x138] sm:$0xff] %vm1789_vm1, %v2244_v32  ;;  %v2249_v42 = vadd.f32 %v4341_v12, %v1582_v45 }
 0x1ee   :  { %v2247_v28 = vadd.f32 %v2246_v5, %v1777_v24 }
 0x1ef   :  { %v2250_v22 = vadd.f32 %v2249_v42, %v1779_v26  ;;  %v1586_v53 = vpop.f32.mrb[64].mxu1 }
 0x1f0   :  { %v1783_v14 = vpop.f32.mrb[64].mxu0  ;;  %1829 = vst [vmem:[#allocation2 + $0x140] sm:$0xff] %v2247_v28  ;;  %v2252_v6 = vadd.f32 %v4346_v43, %v1586_v53  ;;  %v1588_v48 = vpop.f32.mrb[65].mxu1 }
 0x1f1   :  { %v1785_v40 = vpop.f32.mrb[65].mxu0  ;;  %1830 = vst.msk [vmem:[#allocation2 + $0x148] sm:$0xff] %vm1789_vm1, %v2250_v22  ;;  %v2255_v36 = vadd.f32 %v4350_v15, %v1588_v48 }
 0x1f2   :  { %v2253_v47 = vadd.f32 %v2252_v6, %v1783_v14 }
 0x1f3   :  { %v2256_v59 = vadd.f32 %v2255_v36, %v1785_v40 }
 0x1f4   :  { %1831 = vst [vmem:[#allocation2 + $0x150] sm:$0xff] %v2253_v47 }
 0x1f5   :  { %1832 = vst.msk [vmem:[#allocation2 + $0x158] sm:$0xff] %vm1789_vm1, %v2256_v59 }
 0x1f6   :  { %2368 = shalt.err (!%p2365_p4)
}
 0x1f7   :  { %s2369_s11 = scalar_lea.hbm %s4402_s3, 5632 }
 0x1f8   :  { %p2370_p5 = scmp.ne.s32.totalorder %s4402_s3, %s2369_s11  ;;  %p2373_p6 = scmp.lt.u32.totalorder %s2369_s11, %s4402_s3 }
 0x1fa   :  { %p2375_p7 = pnand %p2373_p6, %p2370_p5 }
 0x1fc   :  { %2378 = shalt.err (!%p2375_p7)
}
 0x1fd   :  { %s2383_s15 = smov 256   ;;  %s2384_s16 = smov 16  }
 0x1fe   :  { %1844 = dma.vmem_to_hbm [thread:$0]  %s1839_s8, 5632, %s4402_s3, [#allocation3], %s2383_s15, %s2383_s15, %s2384_s16  }
 0x1ff   :  { %2379 = dma.done.wait [#allocation3], 5632  }
 0x200   :  { %2380 = vsyncadd [#allocation3], 4294961664 }
 0x201   :  { %1848 = vsyncpa [#allocation3], 1 }

</bundles_post_ra>
